<compile_context>
chip_gen: v6e
topology: v6e:2x2x1
jax: 0.10.0
libtpu: 0.0.40
codegen_flags: <defaults>
</compile_context>

<pallas_src>
import functools

import jax
import jax.numpy as jnp
from jax.experimental import pallas as pl
from jax.experimental.pallas import tpu as pltpu


def _round_up(x, m):
    return ((x + m - 1) // m) * m


def _pad2d(w, rows, cols, dtype=jnp.float32):
    # Zero padding everywhere: padded weight ROWS are zero, so garbage in padded input
    # channels can never contaminate real output channels; padded bias columns are zero
    # so padded channels stay exactly 0 through every relu.  Do not change this.
    out = jnp.zeros((rows, cols), dtype)
    return out.at[: w.shape[0], : w.shape[1]].set(w.astype(dtype))


# ----------------------------------------------------------------------------
# Pallas kernel: one (batch, N-tile) grid step.
# ----------------------------------------------------------------------------
def rfa_kernel(xyz_ref, nxyz_ref, feat_ref, fnb_ref,
               w1d_ref, w1q_ref, w1n_ref, b1_ref,
               w3a_ref, w3b_ref, b3_ref, w4_ref, b4_ref,
               out_ref, *, pooling):
    f32, bf16 = jnp.float32, jnp.bfloat16
    _, K, TN, CP = fnb_ref.shape

    xyz_q = xyz_ref[0]                       # (TN, 3)    query xyz, f32
    nxv = nxyz_ref[0]                        # (TN, 3K)   packed gathered neighbour xyz, f32

    # ---- query-only part of folded mlp1 (+ bias), once per tile: xyz_q @ w1q + b1.
    #      Contraction dim is 3, so keep it off the MXU (VPU outer products).
    q_term = (b1_ref[...]
              + xyz_q[:, 0:1] * w1q_ref[0:1, :]
              + xyz_q[:, 1:2] * w1q_ref[1:2, :]
              + xyz_q[:, 2:3] * w1q_ref[2:3, :])               # (TN, CP) f32

    # Hoist the (1,CP)->(TN,CP) weight/bias broadcasts out of the K loop
    # (broadcast_in_dim is not CSE'd by JAX).
    w1d_b = jnp.broadcast_to(w1d_ref[...], (TN, CP))
    w1n_b = [jnp.broadcast_to(w1n_ref[j:j + 1, :], (TN, CP)) for j in range(3)]
    b3_b = jnp.broadcast_to(b3_ref[...], (TN, CP))

    pooled = None
    for k in range(K):                       # K is small & static -> fully unrolled
        # ---- relative position encoding + folded mlp1, all on the VPU ----------
        fx = q_term
        d2 = None
        for j in range(3):
            nxj = nxv[:, 3 * k + j:3 * k + j + 1]               # (TN, 1)
            relj = xyz_q[:, j:j + 1] - nxj
            d2 = relj * relj if d2 is None else d2 + relj * relj
            fx = fx + nxj * w1n_b[j]                            # neighbour-xyz term
        dis = jnp.sqrt(d2)                                      # (TN, 1)
        fx = jnp.maximum(fx + dis * w1d_b, 0.0).astype(bf16)    # (TN, CP) bf16

        # ---- mlp3 on the (virtual) channel concat via split weights (bf16 MXU) --
        z = (jnp.dot(fnb_ref[0, k], w3a_ref[...], preferred_element_type=f32)
             + jnp.dot(fx, w3b_ref[...], preferred_element_type=f32)
             + b3_b)
        z = jnp.maximum(z, 0.0)                                 # (TN, CP) f32

        # ---- K pooling fused into the same loop ('mean' 1/K pre-folded) ---------
        if pooled is None:
            pooled = z
        elif pooling == 'max':
            pooled = jnp.maximum(pooled, z)
        else:                                                   # 'mean'
            pooled = pooled + z

    # ---- residual + mlp4 ----------------------------------------------------------
    f_res = feat_ref[0] + pooled                                # (TN, CP) f32
    out = jnp.dot(f_res.astype(bf16), w4_ref[...], preferred_element_type=f32)
    out_ref[0] = jnp.maximum(out + b4_ref[...], 0.0)


# ----------------------------------------------------------------------------
# Wrapper
# ----------------------------------------------------------------------------
def rfa_forward(feature, xyz, neigh_idx, params, pooling='max'):
    assert pooling in ('max', 'mean')
    B, N, C = feature.shape
    K = neigh_idx.shape[-1]
    f32, bf16 = jnp.float32, jnp.bfloat16

    # lane-dense channel padding
    CP = _round_up(max(C, 1), 128)

    # ---- generation-aware tile / VMEM budget -------------------------------------
    try:
        vmem_cap = int(pltpu.get_tpu_info().vmem_capacity_bytes)
    except Exception:                       # non-TPU backend / older runtime
        vmem_cap = 64 * 1024 * 1024
    # 96 MiB scoped limit on 128-MiB chips (v5e/v6e), 48 MiB on 64-MiB v7x.
    vmem_limit = min(max(vmem_cap - 16 * 1024 * 1024, 32 * 1024 * 1024),
                     96 * 1024 * 1024)
    tile_budget = vmem_limit // 2           # headroom for Mosaic internal scratch

    def _tile_bytes(tn):
        fnb = 2 * K * tn * CP * 2                                # gathered f, bf16, x2 buf
        nxp = 2 * tn * max(_round_up(3 * K, 128), 128) * 4       # packed neighbour xyz
        xq = 2 * tn * 128 * 4                                    # query xyz (lane padded)
        ft = 2 * tn * CP * 4                                     # feature
        out = 2 * tn * CP * 4                                    # output
        wts = 2 * (3 * CP * CP * 2 + 8 * CP * 4)                 # w3a/w3b/w4 + biases
        tmp = 12 * tn * CP * 4                                   # accumulators / broadcasts / spills
        return fnb + nxp + xq + ft + out + wts + tmp

    n8 = max(_round_up(N, 8), 8)
    candidates = ((512, 256, 128, 64, 32, 16, 8)
                  if vmem_cap >= 100 * 1024 * 1024 else
                  (256, 128, 64, 32, 16, 8))
    TN = 8
    for cand in candidates:
        if cand <= n8 and _tile_bytes(cand) <= tile_budget:
            TN = cand
            break
    NP = _round_up(N, TN)
    T = NP // TN

    # ---- fold & pad weights (Conv2d 1x1 + BN(eval) already fused in params) --------
    w1 = _pad2d(params['w1'], 10, CP)                 # rows: [dis, rel(3), tile(3), neigh(3)]
    b1 = _pad2d(params['b1'], 1, CP)
    w1_d = w1[0:1]                                    # (1, CP) distance term (VPU)
    w1_q = w1[1:4] + w1[4:7]                          # (3, CP) query-xyz term
    w1_n = w1[7:10] - w1[1:4]                         # (3, CP) neighbour-xyz term
    w2 = _pad2d(params['w2'], CP, CP).astype(bf16)
    b2 = _pad2d(params['b2'], 1, CP)
    w3 = params['w3'].astype(f32)
    b3 = _pad2d(params['b3'], 1, CP)
    w3a = _pad2d(w3[:C], CP, CP)                      # multiplies gathered f
    w3b = _pad2d(w3[C:], CP, CP)                      # multiplies f_xyz
    if pooling == 'mean':
        # mean_k relu(z_k) == sum_k relu(z_k / K)  (relu is positively homogeneous)
        w3a, w3b, b3 = w3a / K, w3b / K, b3 / K
    w3a, w3b = w3a.astype(bf16), w3b.astype(bf16)
    w4 = _pad2d(params['w4'], CP, CP).astype(bf16)
    b4 = _pad2d(params['b4'], 1, CP)

    # ---- channel-pad activations ----------------------------------------------------
    feat_cp = jnp.zeros((B, N, CP), f32).at[:, :, :C].set(feature)

    # ---- mlp2 once per batch (cheap XLA matmul) --------------------------------------
    f = jax.nn.relu(jnp.dot(feat_cp.astype(bf16), w2, preferred_element_type=f32)
                    + b2).astype(bf16)                                       # (B, N, CP)

    # ---- neighbour gathers (XLA) ------------------------------------------------------
    # TODO(synk): move these row-gathers in-kernel (VMEM-resident per-batch f + scalar-
    # prefetched neigh_idx) once Mosaic exposes a general vector row-gather; per-row
    # dynamic loads / DMAs are far slower than XLA's gather today.
    def gather_kmajor(tbl, idx):            # tbl (N, D), idx (N, K) -> (K, N, D)
        flat = jnp.transpose(idx, (1, 0)).reshape(-1)
        return jnp.take(tbl, flat, axis=0).reshape(K, N, -1)

    def gather_nmajor_packed(tbl, idx):     # tbl (N, D), idx (N, K) -> (N, K*D)
        return jnp.take(tbl, idx.reshape(-1), axis=0).reshape(N, K * tbl.shape[-1])

    f_nb = jax.vmap(gather_kmajor)(f, neigh_idx)                # (B, K, N, CP)  bf16
    nxyz = jax.vmap(gather_nmajor_packed)(xyz, neigh_idx)       # (B, N, 3K)     f32

    # ---- pad the point axis to a multiple of TILE_N (padded rows are sliced off) -----
    def pad_n(x, axis):
        if NP == N:
            return x
        pads = [(0, 0)] * x.ndim
        pads[axis] = (0, NP - N)
        return jnp.pad(x, pads)

    xyz_p = pad_n(xyz, 1)          # (B, NP, 3)
    nxyz_p = pad_n(nxyz, 1)        # (B, NP, 3K)
    feat_p = pad_n(feat_cp, 1)     # (B, NP, CP)
    f_nb_p = pad_n(f_nb, 2)        # (B, K, NP, CP)

    rep = lambda b, t: (0, 0)

    out = pl.pallas_call(
        functools.partial(rfa_kernel, pooling=pooling),
        out_shape=jax.ShapeDtypeStruct((B, NP, CP), f32),
        grid_spec=pltpu.PrefetchScalarGridSpec(
            num_scalar_prefetch=0,
            grid=(B, T),
            in_specs=[
                pl.BlockSpec((1, TN, 3), lambda b, t: (b, t, 0)),         # query xyz
                pl.BlockSpec((1, TN, 3 * K), lambda b, t: (b, t, 0)),     # packed neigh xyz
                pl.BlockSpec((1, TN, CP), lambda b, t: (b, t, 0)),        # feature
                pl.BlockSpec((1, K, TN, CP), lambda b, t: (b, 0, t, 0)),  # gathered mlp2 out
                pl.BlockSpec((1, CP), rep),    # w1_d
                pl.BlockSpec((3, CP), rep),    # w1_q
                pl.BlockSpec((3, CP), rep),    # w1_n
                pl.BlockSpec((1, CP), rep),    # b1
                pl.BlockSpec((CP, CP), rep),   # w3a
                pl.BlockSpec((CP, CP), rep),   # w3b
                pl.BlockSpec((1, CP), rep),    # b3
                pl.BlockSpec((CP, CP), rep),   # w4
                pl.BlockSpec((1, CP), rep),    # b4
            ],
            out_specs=pl.BlockSpec((1, TN, CP), lambda b, t: (b, t, 0)),
        ),
        compiler_params=pltpu.CompilerParams(
            dimension_semantics=("parallel", "parallel"),
            vmem_limit_bytes=int(vmem_limit)),
    )(xyz_p, nxyz_p, feat_p, f_nb_p,
      w1_d, w1_q, w1_n, b1, w3a, w3b, b3, w4, b4)

    return out[:, :N, :C]


# ----------------------------------------------------------------------------
# Deterministic parameters (Conv2d 1x1 + BatchNorm(eval) folded)
# ----------------------------------------------------------------------------
def _fused_conv_bn(key, c_in, c_out, eps=1e-5):
    k1, k2, k3, k4, k5 = jax.random.split(key, 5)
    w = jax.random.normal(k1, (c_in, c_out), jnp.float32) / jnp.sqrt(c_in)
    gamma = 1.0 + 0.1 * jax.random.normal(k2, (c_out,), jnp.float32)
    beta = 0.1 * jax.random.normal(k3, (c_out,), jnp.float32)
    mean = 0.1 * jax.random.normal(k4, (c_out,), jnp.float32)
    var = 1.0 + 0.1 * jnp.abs(jax.random.normal(k5, (c_out,), jnp.float32))
    scale = gamma / jnp.sqrt(var + eps)
    return w * scale[None, :], (beta - mean * scale)[None, :]


def make_params(key, d_in):
    ks = jax.random.split(key, 4)
    w1, b1 = _fused_conv_bn(ks[0], 10, d_in)
    w2, b2 = _fused_conv_bn(ks[1], d_in, d_in)
    w3, b3 = _fused_conv_bn(ks[2], 2 * d_in, d_in)
    w4, b4 = _fused_conv_bn(ks[3], d_in, d_in)
    return dict(w1=w1, b1=b1, w2=w2, b2=b2, w3=w3, b3=b3, w4=w4, b4=b4)


# ----------------------------------------------------------------------------
# Pure-f32 reference (channels-last) mirroring the torch module
# ----------------------------------------------------------------------------
def rfa_reference(feature, xyz, neigh_idx, params, pooling='max'):
    B, N, C = feature.shape
    K = neigh_idx.shape[-1]

    def gather(tbl, idx):
        return jnp.take(tbl, idx.reshape(-1), axis=0).reshape(N, K, -1)

    gather_b = jax.vmap(gather)
    neighbor_xyz = gather_b(xyz, neigh_idx)                      # (B, N, K, 3)
    xyz_tile = jnp.broadcast_to(xyz[:, :, None, :], (B, N, K, 3))
    rel = xyz_tile - neighbor_xyz
    dis = jnp.sqrt(jnp.sum(rel * rel, axis=-1, keepdims=True))
    f_xyz = jnp.concatenate([dis, rel, xyz_tile, neighbor_xyz], axis=-1)
    f_xyz = jax.nn.relu(f_xyz @ params['w1'] + params['b1'])
    f = jax.nn.relu(feature @ params['w2'] + params['b2'])
    f_nb = gather_b(f, neigh_idx)
    f_cat = jnp.concatenate([f_nb, f_xyz], axis=-1)
    f_cat = jax.nn.relu(f_cat @ params['w3'] + params['b3'])
    pooled = jnp.max(f_cat, axis=2) if pooling == 'max' else jnp.mean(f_cat, axis=2)
    return jax.nn.relu((feature + pooled) @ params['w4'] + params['b4'])


# ----------------------------------------------------------------------------
if __name__ == "__main__":
    B, N, K, d_in = 2, 16, 8, 8          # small synthetic shapes

    key = jax.random.PRNGKey(0)
    k_feat, k_xyz, k_idx, k_par = jax.random.split(key, 4)

    feature = jax.random.normal(k_feat, (B, N, d_in), jnp.float32)
    xyz = jax.random.normal(k_xyz, (B, N, 3), jnp.float32)
    neigh_idx = jax.random.randint(k_idx, (B, N, K), 0, N, jnp.int32)
    params = make_params(k_par, d_in)

    for pooling in ('max', 'mean'):
        out = jax.block_until_ready(
            rfa_forward(feature, xyz, neigh_idx, params, pooling=pooling))
        ref = rfa_reference(feature, xyz, neigh_idx, params, pooling=pooling)
        assert out.shape == (B, N, d_in)
        # Tolerance accounts for bf16 MXU operands (f32 accumulation) vs the f32
        # reference; structural bugs would be O(1) off.
        assert jnp.allclose(out, ref, atol=1e-1, rtol=1e-1), f"mismatch ({pooling})"

    print("KERNEL_OK")
</pallas_src>

<mosaic_0001>
module attributes {stable_mosaic.version = 11 : i64} {
  func.func @rfa_kernel(%arg0: i32, %arg1: i32, %arg2: memref<1x16x3xf32, #tpu.memory_space<vmem>>, %arg3: memref<1x16x24xf32, #tpu.memory_space<vmem>>, %arg4: memref<1x16x128xf32, #tpu.memory_space<vmem>>, %arg5: memref<1x8x16x128xbf16, #tpu.memory_space<vmem>>, %arg6: memref<1x128xf32, #tpu.memory_space<vmem>>, %arg7: memref<3x128xf32, #tpu.memory_space<vmem>>, %arg8: memref<3x128xf32, #tpu.memory_space<vmem>>, %arg9: memref<1x128xf32, #tpu.memory_space<vmem>>, %arg10: memref<128x128xbf16, #tpu.memory_space<vmem>>, %arg11: memref<128x128xbf16, #tpu.memory_space<vmem>>, %arg12: memref<1x128xf32, #tpu.memory_space<vmem>>, %arg13: memref<128x128xbf16, #tpu.memory_space<vmem>>, %arg14: memref<1x128xf32, #tpu.memory_space<vmem>>, %arg15: memref<1x16x128xf32, #tpu.memory_space<vmem>>) attributes {dimension_semantics = [#tpu.dimension_semantics<parallel>, #tpu.dimension_semantics<parallel>], iteration_bounds = array<i64: 2, 1>, scalar_prefetch = 0 : i64, scratch_operands = 0 : i64, tpu.core_type = #tpu.core_type<tc>, window_params = [{transform_indices = @transform_0, window_bounds = array<i64: 1, 16, 3>}, {transform_indices = @transform_1, window_bounds = array<i64: 1, 16, 24>}, {transform_indices = @transform_2, window_bounds = array<i64: 1, 16, 128>}, {transform_indices = @transform_3, window_bounds = array<i64: 1, 8, 16, 128>}, {pipeline_mode = #tpu.pipeline_mode<synchronous>, transform_indices = @transform_4, window_bounds = array<i64: 1, 128>}, {pipeline_mode = #tpu.pipeline_mode<synchronous>, transform_indices = @transform_5, window_bounds = array<i64: 3, 128>}, {pipeline_mode = #tpu.pipeline_mode<synchronous>, transform_indices = @transform_6, window_bounds = array<i64: 3, 128>}, {pipeline_mode = #tpu.pipeline_mode<synchronous>, transform_indices = @transform_7, window_bounds = array<i64: 1, 128>}, {pipeline_mode = #tpu.pipeline_mode<synchronous>, transform_indices = @transform_8, window_bounds = array<i64: 128, 128>}, {pipeline_mode = #tpu.pipeline_mode<synchronous>, transform_indices = @transform_9, window_bounds = array<i64: 128, 128>}, {pipeline_mode = #tpu.pipeline_mode<synchronous>, transform_indices = @transform_10, window_bounds = array<i64: 1, 128>}, {pipeline_mode = #tpu.pipeline_mode<synchronous>, transform_indices = @transform_11, window_bounds = array<i64: 128, 128>}, {pipeline_mode = #tpu.pipeline_mode<synchronous>, transform_indices = @transform_12, window_bounds = array<i64: 1, 128>}, {transform_indices = @transform_13, window_bounds = array<i64: 1, 16, 128>}]} {
    %c0 = arith.constant 0 : index
    %c0_0 = arith.constant 0 : index
    %c0_1 = arith.constant 0 : index
    %0 = vector.load %arg2[%c0, %c0_0, %c0_1] : memref<1x16x3xf32, #tpu.memory_space<vmem>>, vector<1x16x3xf32>
    %1 = vector.shape_cast %0 : vector<1x16x3xf32> to vector<16x3xf32>
    %c0_2 = arith.constant 0 : index
    %c0_3 = arith.constant 0 : index
    %c0_4 = arith.constant 0 : index
    %2 = vector.load %arg3[%c0_2, %c0_3, %c0_4] : memref<1x16x24xf32, #tpu.memory_space<vmem>>, vector<1x16x24xf32>
    %3 = vector.shape_cast %2 : vector<1x16x24xf32> to vector<16x24xf32>
    %c0_5 = arith.constant 0 : index
    %c0_6 = arith.constant 0 : index
    %4 = vector.load %arg9[%c0_5, %c0_6] : memref<1x128xf32, #tpu.memory_space<vmem>>, vector<1x128xf32>
    %5 = vector.extract_strided_slice %1 {offsets = [0, 0], sizes = [16, 1], strides = [1, 1]} : vector<16x3xf32> to vector<16x1xf32>
    %c0_7 = arith.constant 0 : index
    %c0_8 = arith.constant 0 : index
    %6 = vector.load %arg7[%c0_7, %c0_8] : memref<3x128xf32, #tpu.memory_space<vmem>>, vector<1x128xf32>
    %7 = vector.broadcast %5 : vector<16x1xf32> to vector<16x128xf32>
    %8 = vector.broadcast %6 : vector<1x128xf32> to vector<16x128xf32>
    %9 = arith.mulf %7, %8 : vector<16x128xf32>
    %10 = vector.broadcast %4 : vector<1x128xf32> to vector<16x128xf32>
    %11 = arith.addf %10, %9 : vector<16x128xf32>
    %12 = vector.extract_strided_slice %1 {offsets = [0, 1], sizes = [16, 1], strides = [1, 1]} : vector<16x3xf32> to vector<16x1xf32>
    %c1 = arith.constant 1 : index
    %c0_9 = arith.constant 0 : index
    %13 = vector.load %arg7[%c1, %c0_9] : memref<3x128xf32, #tpu.memory_space<vmem>>, vector<1x128xf32>
    %14 = vector.broadcast %12 : vector<16x1xf32> to vector<16x128xf32>
    %15 = vector.broadcast %13 : vector<1x128xf32> to vector<16x128xf32>
    %16 = arith.mulf %14, %15 : vector<16x128xf32>
    %17 = arith.addf %11, %16 : vector<16x128xf32>
    %18 = vector.extract_strided_slice %1 {offsets = [0, 2], sizes = [16, 1], strides = [1, 1]} : vector<16x3xf32> to vector<16x1xf32>
    %c2 = arith.constant 2 : index
    %c0_10 = arith.constant 0 : index
    %19 = vector.load %arg7[%c2, %c0_10] : memref<3x128xf32, #tpu.memory_space<vmem>>, vector<1x128xf32>
    %20 = vector.broadcast %18 : vector<16x1xf32> to vector<16x128xf32>
    %21 = vector.broadcast %19 : vector<1x128xf32> to vector<16x128xf32>
    %22 = arith.mulf %20, %21 : vector<16x128xf32>
    %23 = arith.addf %17, %22 : vector<16x128xf32>
    %c0_11 = arith.constant 0 : index
    %c0_12 = arith.constant 0 : index
    %24 = vector.load %arg6[%c0_11, %c0_12] : memref<1x128xf32, #tpu.memory_space<vmem>>, vector<1x128xf32>
    %25 = vector.shape_cast %24 : vector<1x128xf32> to vector<1x128xf32>
    %26 = vector.broadcast %25 : vector<1x128xf32> to vector<16x128xf32>
    %c0_13 = arith.constant 0 : index
    %c0_14 = arith.constant 0 : index
    %27 = vector.load %arg8[%c0_13, %c0_14] : memref<3x128xf32, #tpu.memory_space<vmem>>, vector<1x128xf32>
    %28 = vector.shape_cast %27 : vector<1x128xf32> to vector<1x128xf32>
    %29 = vector.broadcast %28 : vector<1x128xf32> to vector<16x128xf32>
    %c1_15 = arith.constant 1 : index
    %c0_16 = arith.constant 0 : index
    %30 = vector.load %arg8[%c1_15, %c0_16] : memref<3x128xf32, #tpu.memory_space<vmem>>, vector<1x128xf32>
    %31 = vector.shape_cast %30 : vector<1x128xf32> to vector<1x128xf32>
    %32 = vector.broadcast %31 : vector<1x128xf32> to vector<16x128xf32>
    %c2_17 = arith.constant 2 : index
    %c0_18 = arith.constant 0 : index
    %33 = vector.load %arg8[%c2_17, %c0_18] : memref<3x128xf32, #tpu.memory_space<vmem>>, vector<1x128xf32>
    %34 = vector.shape_cast %33 : vector<1x128xf32> to vector<1x128xf32>
    %35 = vector.broadcast %34 : vector<1x128xf32> to vector<16x128xf32>
    %c0_19 = arith.constant 0 : index
    %c0_20 = arith.constant 0 : index
    %36 = vector.load %arg12[%c0_19, %c0_20] : memref<1x128xf32, #tpu.memory_space<vmem>>, vector<1x128xf32>
    %37 = vector.shape_cast %36 : vector<1x128xf32> to vector<1x128xf32>
    %38 = vector.broadcast %37 : vector<1x128xf32> to vector<16x128xf32>
    %39 = vector.extract_strided_slice %3 {offsets = [0, 0], sizes = [16, 1], strides = [1, 1]} : vector<16x24xf32> to vector<16x1xf32>
    %40 = vector.extract_strided_slice %1 {offsets = [0, 0], sizes = [16, 1], strides = [1, 1]} : vector<16x3xf32> to vector<16x1xf32>
    %41 = arith.subf %40, %39 : vector<16x1xf32>
    %42 = arith.mulf %41, %41 : vector<16x1xf32>
    %43 = vector.broadcast %39 : vector<16x1xf32> to vector<16x128xf32>
    %44 = arith.mulf %43, %29 : vector<16x128xf32>
    %45 = arith.addf %23, %44 : vector<16x128xf32>
    %46 = vector.extract_strided_slice %3 {offsets = [0, 1], sizes = [16, 1], strides = [1, 1]} : vector<16x24xf32> to vector<16x1xf32>
    %47 = vector.extract_strided_slice %1 {offsets = [0, 1], sizes = [16, 1], strides = [1, 1]} : vector<16x3xf32> to vector<16x1xf32>
    %48 = arith.subf %47, %46 : vector<16x1xf32>
    %49 = arith.mulf %48, %48 : vector<16x1xf32>
    %50 = arith.addf %42, %49 : vector<16x1xf32>
    %51 = vector.broadcast %46 : vector<16x1xf32> to vector<16x128xf32>
    %52 = arith.mulf %51, %32 : vector<16x128xf32>
    %53 = arith.addf %45, %52 : vector<16x128xf32>
    %54 = vector.extract_strided_slice %3 {offsets = [0, 2], sizes = [16, 1], strides = [1, 1]} : vector<16x24xf32> to vector<16x1xf32>
    %55 = vector.extract_strided_slice %1 {offsets = [0, 2], sizes = [16, 1], strides = [1, 1]} : vector<16x3xf32> to vector<16x1xf32>
    %56 = arith.subf %55, %54 : vector<16x1xf32>
    %57 = arith.mulf %56, %56 : vector<16x1xf32>
    %58 = arith.addf %50, %57 : vector<16x1xf32>
    %59 = vector.broadcast %54 : vector<16x1xf32> to vector<16x128xf32>
    %60 = arith.mulf %59, %35 : vector<16x128xf32>
    %61 = arith.addf %53, %60 : vector<16x128xf32>
    %62 = math.sqrt %58 : vector<16x1xf32>
    %63 = vector.broadcast %62 : vector<16x1xf32> to vector<16x128xf32>
    %64 = arith.mulf %63, %26 : vector<16x128xf32>
    %65 = arith.addf %61, %64 : vector<16x128xf32>
    %cst = arith.constant 0.000000e+00 : f32
    %66 = vector.broadcast %cst : f32 to vector<16x128xf32>
    %67 = arith.maximumf %65, %66 : vector<16x128xf32>
    %68 = arith.truncf %67 : vector<16x128xf32> to vector<16x128xbf16>
    %c0_21 = arith.constant 0 : index
    %c0_22 = arith.constant 0 : index
    %c0_23 = arith.constant 0 : index
    %c0_24 = arith.constant 0 : index
    %69 = vector.load %arg5[%c0_21, %c0_22, %c0_23, %c0_24] : memref<1x8x16x128xbf16, #tpu.memory_space<vmem>>, vector<1x1x16x128xbf16>
    %70 = vector.shape_cast %69 : vector<1x1x16x128xbf16> to vector<16x128xbf16>
    %c0_25 = arith.constant 0 : index
    %c0_26 = arith.constant 0 : index
    %71 = vector.load %arg10[%c0_25, %c0_26] : memref<128x128xbf16, #tpu.memory_space<vmem>>, vector<128x128xbf16>
    %cst_27 = arith.constant dense<0.000000e+00> : vector<16x128xf32>
    %72 = tpu.matmul %70, %71, %cst_27 {dimension_numbers = #tpu.dot_dimension_numbers<[1], [0], [0], [1], [0, 0, 1, 1], [], []>} : vector<16x128xbf16>, vector<128x128xbf16>, vector<16x128xf32> -> vector<16x128xf32>
    %c0_28 = arith.constant 0 : index
    %c0_29 = arith.constant 0 : index
    %73 = vector.load %arg11[%c0_28, %c0_29] : memref<128x128xbf16, #tpu.memory_space<vmem>>, vector<128x128xbf16>
    %cst_30 = arith.constant dense<0.000000e+00> : vector<16x128xf32>
    %74 = tpu.matmul %68, %73, %cst_30 {dimension_numbers = #tpu.dot_dimension_numbers<[1], [0], [0], [1], [0, 0, 1, 1], [], []>} : vector<16x128xbf16>, vector<128x128xbf16>, vector<16x128xf32> -> vector<16x128xf32>
    %75 = arith.addf %72, %74 : vector<16x128xf32>
    %76 = arith.addf %75, %38 : vector<16x128xf32>
    %cst_31 = arith.constant 0.000000e+00 : f32
    %77 = vector.broadcast %cst_31 : f32 to vector<16x128xf32>
    %78 = arith.maximumf %76, %77 : vector<16x128xf32>
    %79 = vector.extract_strided_slice %3 {offsets = [0, 3], sizes = [16, 1], strides = [1, 1]} : vector<16x24xf32> to vector<16x1xf32>
    %80 = vector.extract_strided_slice %1 {offsets = [0, 0], sizes = [16, 1], strides = [1, 1]} : vector<16x3xf32> to vector<16x1xf32>
    %81 = arith.subf %80, %79 : vector<16x1xf32>
    %82 = arith.mulf %81, %81 : vector<16x1xf32>
    %83 = vector.broadcast %79 : vector<16x1xf32> to vector<16x128xf32>
    %84 = arith.mulf %83, %29 : vector<16x128xf32>
    %85 = arith.addf %23, %84 : vector<16x128xf32>
    %86 = vector.extract_strided_slice %3 {offsets = [0, 4], sizes = [16, 1], strides = [1, 1]} : vector<16x24xf32> to vector<16x1xf32>
    %87 = vector.extract_strided_slice %1 {offsets = [0, 1], sizes = [16, 1], strides = [1, 1]} : vector<16x3xf32> to vector<16x1xf32>
    %88 = arith.subf %87, %86 : vector<16x1xf32>
    %89 = arith.mulf %88, %88 : vector<16x1xf32>
    %90 = arith.addf %82, %89 : vector<16x1xf32>
    %91 = vector.broadcast %86 : vector<16x1xf32> to vector<16x128xf32>
    %92 = arith.mulf %91, %32 : vector<16x128xf32>
    %93 = arith.addf %85, %92 : vector<16x128xf32>
    %94 = vector.extract_strided_slice %3 {offsets = [0, 5], sizes = [16, 1], strides = [1, 1]} : vector<16x24xf32> to vector<16x1xf32>
    %95 = vector.extract_strided_slice %1 {offsets = [0, 2], sizes = [16, 1], strides = [1, 1]} : vector<16x3xf32> to vector<16x1xf32>
    %96 = arith.subf %95, %94 : vector<16x1xf32>
    %97 = arith.mulf %96, %96 : vector<16x1xf32>
    %98 = arith.addf %90, %97 : vector<16x1xf32>
    %99 = vector.broadcast %94 : vector<16x1xf32> to vector<16x128xf32>
    %100 = arith.mulf %99, %35 : vector<16x128xf32>
    %101 = arith.addf %93, %100 : vector<16x128xf32>
    %102 = math.sqrt %98 : vector<16x1xf32>
    %103 = vector.broadcast %102 : vector<16x1xf32> to vector<16x128xf32>
    %104 = arith.mulf %103, %26 : vector<16x128xf32>
    %105 = arith.addf %101, %104 : vector<16x128xf32>
    %cst_32 = arith.constant 0.000000e+00 : f32
    %106 = vector.broadcast %cst_32 : f32 to vector<16x128xf32>
    %107 = arith.maximumf %105, %106 : vector<16x128xf32>
    %108 = arith.truncf %107 : vector<16x128xf32> to vector<16x128xbf16>
    %c0_33 = arith.constant 0 : index
    %c1_34 = arith.constant 1 : index
    %c0_35 = arith.constant 0 : index
    %c0_36 = arith.constant 0 : index
    %109 = vector.load %arg5[%c0_33, %c1_34, %c0_35, %c0_36] : memref<1x8x16x128xbf16, #tpu.memory_space<vmem>>, vector<1x1x16x128xbf16>
    %110 = vector.shape_cast %109 : vector<1x1x16x128xbf16> to vector<16x128xbf16>
    %c0_37 = arith.constant 0 : index
    %c0_38 = arith.constant 0 : index
    %111 = vector.load %arg10[%c0_37, %c0_38] : memref<128x128xbf16, #tpu.memory_space<vmem>>, vector<128x128xbf16>
    %cst_39 = arith.constant dense<0.000000e+00> : vector<16x128xf32>
    %112 = tpu.matmul %110, %111, %cst_39 {dimension_numbers = #tpu.dot_dimension_numbers<[1], [0], [0], [1], [0, 0, 1, 1], [], []>} : vector<16x128xbf16>, vector<128x128xbf16>, vector<16x128xf32> -> vector<16x128xf32>
    %c0_40 = arith.constant 0 : index
    %c0_41 = arith.constant 0 : index
    %113 = vector.load %arg11[%c0_40, %c0_41] : memref<128x128xbf16, #tpu.memory_space<vmem>>, vector<128x128xbf16>
    %cst_42 = arith.constant dense<0.000000e+00> : vector<16x128xf32>
    %114 = tpu.matmul %108, %113, %cst_42 {dimension_numbers = #tpu.dot_dimension_numbers<[1], [0], [0], [1], [0, 0, 1, 1], [], []>} : vector<16x128xbf16>, vector<128x128xbf16>, vector<16x128xf32> -> vector<16x128xf32>
    %115 = arith.addf %112, %114 : vector<16x128xf32>
    %116 = arith.addf %115, %38 : vector<16x128xf32>
    %cst_43 = arith.constant 0.000000e+00 : f32
    %117 = vector.broadcast %cst_43 : f32 to vector<16x128xf32>
    %118 = arith.maximumf %116, %117 : vector<16x128xf32>
    %119 = arith.maximumf %78, %118 : vector<16x128xf32>
    %120 = vector.extract_strided_slice %3 {offsets = [0, 6], sizes = [16, 1], strides = [1, 1]} : vector<16x24xf32> to vector<16x1xf32>
    %121 = vector.extract_strided_slice %1 {offsets = [0, 0], sizes = [16, 1], strides = [1, 1]} : vector<16x3xf32> to vector<16x1xf32>
    %122 = arith.subf %121, %120 : vector<16x1xf32>
    %123 = arith.mulf %122, %122 : vector<16x1xf32>
    %124 = vector.broadcast %120 : vector<16x1xf32> to vector<16x128xf32>
    %125 = arith.mulf %124, %29 : vector<16x128xf32>
    %126 = arith.addf %23, %125 : vector<16x128xf32>
    %127 = vector.extract_strided_slice %3 {offsets = [0, 7], sizes = [16, 1], strides = [1, 1]} : vector<16x24xf32> to vector<16x1xf32>
    %128 = vector.extract_strided_slice %1 {offsets = [0, 1], sizes = [16, 1], strides = [1, 1]} : vector<16x3xf32> to vector<16x1xf32>
    %129 = arith.subf %128, %127 : vector<16x1xf32>
    %130 = arith.mulf %129, %129 : vector<16x1xf32>
    %131 = arith.addf %123, %130 : vector<16x1xf32>
    %132 = vector.broadcast %127 : vector<16x1xf32> to vector<16x128xf32>
    %133 = arith.mulf %132, %32 : vector<16x128xf32>
    %134 = arith.addf %126, %133 : vector<16x128xf32>
    %135 = vector.extract_strided_slice %3 {offsets = [0, 8], sizes = [16, 1], strides = [1, 1]} : vector<16x24xf32> to vector<16x1xf32>
    %136 = vector.extract_strided_slice %1 {offsets = [0, 2], sizes = [16, 1], strides = [1, 1]} : vector<16x3xf32> to vector<16x1xf32>
    %137 = arith.subf %136, %135 : vector<16x1xf32>
    %138 = arith.mulf %137, %137 : vector<16x1xf32>
    %139 = arith.addf %131, %138 : vector<16x1xf32>
    %140 = vector.broadcast %135 : vector<16x1xf32> to vector<16x128xf32>
    %141 = arith.mulf %140, %35 : vector<16x128xf32>
    %142 = arith.addf %134, %141 : vector<16x128xf32>
    %143 = math.sqrt %139 : vector<16x1xf32>
    %144 = vector.broadcast %143 : vector<16x1xf32> to vector<16x128xf32>
    %145 = arith.mulf %144, %26 : vector<16x128xf32>
    %146 = arith.addf %142, %145 : vector<16x128xf32>
    %cst_44 = arith.constant 0.000000e+00 : f32
    %147 = vector.broadcast %cst_44 : f32 to vector<16x128xf32>
    %148 = arith.maximumf %146, %147 : vector<16x128xf32>
    %149 = arith.truncf %148 : vector<16x128xf32> to vector<16x128xbf16>
    %c0_45 = arith.constant 0 : index
    %c2_46 = arith.constant 2 : index
    %c0_47 = arith.constant 0 : index
    %c0_48 = arith.constant 0 : index
    %150 = vector.load %arg5[%c0_45, %c2_46, %c0_47, %c0_48] : memref<1x8x16x128xbf16, #tpu.memory_space<vmem>>, vector<1x1x16x128xbf16>
    %151 = vector.shape_cast %150 : vector<1x1x16x128xbf16> to vector<16x128xbf16>
    %c0_49 = arith.constant 0 : index
    %c0_50 = arith.constant 0 : index
    %152 = vector.load %arg10[%c0_49, %c0_50] : memref<128x128xbf16, #tpu.memory_space<vmem>>, vector<128x128xbf16>
    %cst_51 = arith.constant dense<0.000000e+00> : vector<16x128xf32>
    %153 = tpu.matmul %151, %152, %cst_51 {dimension_numbers = #tpu.dot_dimension_numbers<[1], [0], [0], [1], [0, 0, 1, 1], [], []>} : vector<16x128xbf16>, vector<128x128xbf16>, vector<16x128xf32> -> vector<16x128xf32>
    %c0_52 = arith.constant 0 : index
    %c0_53 = arith.constant 0 : index
    %154 = vector.load %arg11[%c0_52, %c0_53] : memref<128x128xbf16, #tpu.memory_space<vmem>>, vector<128x128xbf16>
    %cst_54 = arith.constant dense<0.000000e+00> : vector<16x128xf32>
    %155 = tpu.matmul %149, %154, %cst_54 {dimension_numbers = #tpu.dot_dimension_numbers<[1], [0], [0], [1], [0, 0, 1, 1], [], []>} : vector<16x128xbf16>, vector<128x128xbf16>, vector<16x128xf32> -> vector<16x128xf32>
    %156 = arith.addf %153, %155 : vector<16x128xf32>
    %157 = arith.addf %156, %38 : vector<16x128xf32>
    %cst_55 = arith.constant 0.000000e+00 : f32
    %158 = vector.broadcast %cst_55 : f32 to vector<16x128xf32>
    %159 = arith.maximumf %157, %158 : vector<16x128xf32>
    %160 = arith.maximumf %119, %159 : vector<16x128xf32>
    %161 = vector.extract_strided_slice %3 {offsets = [0, 9], sizes = [16, 1], strides = [1, 1]} : vector<16x24xf32> to vector<16x1xf32>
    %162 = vector.extract_strided_slice %1 {offsets = [0, 0], sizes = [16, 1], strides = [1, 1]} : vector<16x3xf32> to vector<16x1xf32>
    %163 = arith.subf %162, %161 : vector<16x1xf32>
    %164 = arith.mulf %163, %163 : vector<16x1xf32>
    %165 = vector.broadcast %161 : vector<16x1xf32> to vector<16x128xf32>
    %166 = arith.mulf %165, %29 : vector<16x128xf32>
    %167 = arith.addf %23, %166 : vector<16x128xf32>
    %168 = vector.extract_strided_slice %3 {offsets = [0, 10], sizes = [16, 1], strides = [1, 1]} : vector<16x24xf32> to vector<16x1xf32>
    %169 = vector.extract_strided_slice %1 {offsets = [0, 1], sizes = [16, 1], strides = [1, 1]} : vector<16x3xf32> to vector<16x1xf32>
    %170 = arith.subf %169, %168 : vector<16x1xf32>
    %171 = arith.mulf %170, %170 : vector<16x1xf32>
    %172 = arith.addf %164, %171 : vector<16x1xf32>
    %173 = vector.broadcast %168 : vector<16x1xf32> to vector<16x128xf32>
    %174 = arith.mulf %173, %32 : vector<16x128xf32>
    %175 = arith.addf %167, %174 : vector<16x128xf32>
    %176 = vector.extract_strided_slice %3 {offsets = [0, 11], sizes = [16, 1], strides = [1, 1]} : vector<16x24xf32> to vector<16x1xf32>
    %177 = vector.extract_strided_slice %1 {offsets = [0, 2], sizes = [16, 1], strides = [1, 1]} : vector<16x3xf32> to vector<16x1xf32>
    %178 = arith.subf %177, %176 : vector<16x1xf32>
    %179 = arith.mulf %178, %178 : vector<16x1xf32>
    %180 = arith.addf %172, %179 : vector<16x1xf32>
    %181 = vector.broadcast %176 : vector<16x1xf32> to vector<16x128xf32>
    %182 = arith.mulf %181, %35 : vector<16x128xf32>
    %183 = arith.addf %175, %182 : vector<16x128xf32>
    %184 = math.sqrt %180 : vector<16x1xf32>
    %185 = vector.broadcast %184 : vector<16x1xf32> to vector<16x128xf32>
    %186 = arith.mulf %185, %26 : vector<16x128xf32>
    %187 = arith.addf %183, %186 : vector<16x128xf32>
    %cst_56 = arith.constant 0.000000e+00 : f32
    %188 = vector.broadcast %cst_56 : f32 to vector<16x128xf32>
    %189 = arith.maximumf %187, %188 : vector<16x128xf32>
    %190 = arith.truncf %189 : vector<16x128xf32> to vector<16x128xbf16>
    %c0_57 = arith.constant 0 : index
    %c3 = arith.constant 3 : index
    %c0_58 = arith.constant 0 : index
    %c0_59 = arith.constant 0 : index
    %191 = vector.load %arg5[%c0_57, %c3, %c0_58, %c0_59] : memref<1x8x16x128xbf16, #tpu.memory_space<vmem>>, vector<1x1x16x128xbf16>
    %192 = vector.shape_cast %191 : vector<1x1x16x128xbf16> to vector<16x128xbf16>
    %c0_60 = arith.constant 0 : index
    %c0_61 = arith.constant 0 : index
    %193 = vector.load %arg10[%c0_60, %c0_61] : memref<128x128xbf16, #tpu.memory_space<vmem>>, vector<128x128xbf16>
    %cst_62 = arith.constant dense<0.000000e+00> : vector<16x128xf32>
    %194 = tpu.matmul %192, %193, %cst_62 {dimension_numbers = #tpu.dot_dimension_numbers<[1], [0], [0], [1], [0, 0, 1, 1], [], []>} : vector<16x128xbf16>, vector<128x128xbf16>, vector<16x128xf32> -> vector<16x128xf32>
    %c0_63 = arith.constant 0 : index
    %c0_64 = arith.constant 0 : index
    %195 = vector.load %arg11[%c0_63, %c0_64] : memref<128x128xbf16, #tpu.memory_space<vmem>>, vector<128x128xbf16>
    %cst_65 = arith.constant dense<0.000000e+00> : vector<16x128xf32>
    %196 = tpu.matmul %190, %195, %cst_65 {dimension_numbers = #tpu.dot_dimension_numbers<[1], [0], [0], [1], [0, 0, 1, 1], [], []>} : vector<16x128xbf16>, vector<128x128xbf16>, vector<16x128xf32> -> vector<16x128xf32>
    %197 = arith.addf %194, %196 : vector<16x128xf32>
    %198 = arith.addf %197, %38 : vector<16x128xf32>
    %cst_66 = arith.constant 0.000000e+00 : f32
    %199 = vector.broadcast %cst_66 : f32 to vector<16x128xf32>
    %200 = arith.maximumf %198, %199 : vector<16x128xf32>
    %201 = arith.maximumf %160, %200 : vector<16x128xf32>
    %202 = vector.extract_strided_slice %3 {offsets = [0, 12], sizes = [16, 1], strides = [1, 1]} : vector<16x24xf32> to vector<16x1xf32>
    %203 = vector.extract_strided_slice %1 {offsets = [0, 0], sizes = [16, 1], strides = [1, 1]} : vector<16x3xf32> to vector<16x1xf32>
    %204 = arith.subf %203, %202 : vector<16x1xf32>
    %205 = arith.mulf %204, %204 : vector<16x1xf32>
    %206 = vector.broadcast %202 : vector<16x1xf32> to vector<16x128xf32>
    %207 = arith.mulf %206, %29 : vector<16x128xf32>
    %208 = arith.addf %23, %207 : vector<16x128xf32>
    %209 = vector.extract_strided_slice %3 {offsets = [0, 13], sizes = [16, 1], strides = [1, 1]} : vector<16x24xf32> to vector<16x1xf32>
    %210 = vector.extract_strided_slice %1 {offsets = [0, 1], sizes = [16, 1], strides = [1, 1]} : vector<16x3xf32> to vector<16x1xf32>
    %211 = arith.subf %210, %209 : vector<16x1xf32>
    %212 = arith.mulf %211, %211 : vector<16x1xf32>
    %213 = arith.addf %205, %212 : vector<16x1xf32>
    %214 = vector.broadcast %209 : vector<16x1xf32> to vector<16x128xf32>
    %215 = arith.mulf %214, %32 : vector<16x128xf32>
    %216 = arith.addf %208, %215 : vector<16x128xf32>
    %217 = vector.extract_strided_slice %3 {offsets = [0, 14], sizes = [16, 1], strides = [1, 1]} : vector<16x24xf32> to vector<16x1xf32>
    %218 = vector.extract_strided_slice %1 {offsets = [0, 2], sizes = [16, 1], strides = [1, 1]} : vector<16x3xf32> to vector<16x1xf32>
    %219 = arith.subf %218, %217 : vector<16x1xf32>
    %220 = arith.mulf %219, %219 : vector<16x1xf32>
    %221 = arith.addf %213, %220 : vector<16x1xf32>
    %222 = vector.broadcast %217 : vector<16x1xf32> to vector<16x128xf32>
    %223 = arith.mulf %222, %35 : vector<16x128xf32>
    %224 = arith.addf %216, %223 : vector<16x128xf32>
    %225 = math.sqrt %221 : vector<16x1xf32>
    %226 = vector.broadcast %225 : vector<16x1xf32> to vector<16x128xf32>
    %227 = arith.mulf %226, %26 : vector<16x128xf32>
    %228 = arith.addf %224, %227 : vector<16x128xf32>
    %cst_67 = arith.constant 0.000000e+00 : f32
    %229 = vector.broadcast %cst_67 : f32 to vector<16x128xf32>
    %230 = arith.maximumf %228, %229 : vector<16x128xf32>
    %231 = arith.truncf %230 : vector<16x128xf32> to vector<16x128xbf16>
    %c0_68 = arith.constant 0 : index
    %c4 = arith.constant 4 : index
    %c0_69 = arith.constant 0 : index
    %c0_70 = arith.constant 0 : index
    %232 = vector.load %arg5[%c0_68, %c4, %c0_69, %c0_70] : memref<1x8x16x128xbf16, #tpu.memory_space<vmem>>, vector<1x1x16x128xbf16>
    %233 = vector.shape_cast %232 : vector<1x1x16x128xbf16> to vector<16x128xbf16>
    %c0_71 = arith.constant 0 : index
    %c0_72 = arith.constant 0 : index
    %234 = vector.load %arg10[%c0_71, %c0_72] : memref<128x128xbf16, #tpu.memory_space<vmem>>, vector<128x128xbf16>
    %cst_73 = arith.constant dense<0.000000e+00> : vector<16x128xf32>
    %235 = tpu.matmul %233, %234, %cst_73 {dimension_numbers = #tpu.dot_dimension_numbers<[1], [0], [0], [1], [0, 0, 1, 1], [], []>} : vector<16x128xbf16>, vector<128x128xbf16>, vector<16x128xf32> -> vector<16x128xf32>
    %c0_74 = arith.constant 0 : index
    %c0_75 = arith.constant 0 : index
    %236 = vector.load %arg11[%c0_74, %c0_75] : memref<128x128xbf16, #tpu.memory_space<vmem>>, vector<128x128xbf16>
    %cst_76 = arith.constant dense<0.000000e+00> : vector<16x128xf32>
    %237 = tpu.matmul %231, %236, %cst_76 {dimension_numbers = #tpu.dot_dimension_numbers<[1], [0], [0], [1], [0, 0, 1, 1], [], []>} : vector<16x128xbf16>, vector<128x128xbf16>, vector<16x128xf32> -> vector<16x128xf32>
    %238 = arith.addf %235, %237 : vector<16x128xf32>
    %239 = arith.addf %238, %38 : vector<16x128xf32>
    %cst_77 = arith.constant 0.000000e+00 : f32
    %240 = vector.broadcast %cst_77 : f32 to vector<16x128xf32>
    %241 = arith.maximumf %239, %240 : vector<16x128xf32>
    %242 = arith.maximumf %201, %241 : vector<16x128xf32>
    %243 = vector.extract_strided_slice %3 {offsets = [0, 15], sizes = [16, 1], strides = [1, 1]} : vector<16x24xf32> to vector<16x1xf32>
    %244 = vector.extract_strided_slice %1 {offsets = [0, 0], sizes = [16, 1], strides = [1, 1]} : vector<16x3xf32> to vector<16x1xf32>
    %245 = arith.subf %244, %243 : vector<16x1xf32>
    %246 = arith.mulf %245, %245 : vector<16x1xf32>
    %247 = vector.broadcast %243 : vector<16x1xf32> to vector<16x128xf32>
    %248 = arith.mulf %247, %29 : vector<16x128xf32>
    %249 = arith.addf %23, %248 : vector<16x128xf32>
    %250 = vector.extract_strided_slice %3 {offsets = [0, 16], sizes = [16, 1], strides = [1, 1]} : vector<16x24xf32> to vector<16x1xf32>
    %251 = vector.extract_strided_slice %1 {offsets = [0, 1], sizes = [16, 1], strides = [1, 1]} : vector<16x3xf32> to vector<16x1xf32>
    %252 = arith.subf %251, %250 : vector<16x1xf32>
    %253 = arith.mulf %252, %252 : vector<16x1xf32>
    %254 = arith.addf %246, %253 : vector<16x1xf32>
    %255 = vector.broadcast %250 : vector<16x1xf32> to vector<16x128xf32>
    %256 = arith.mulf %255, %32 : vector<16x128xf32>
    %257 = arith.addf %249, %256 : vector<16x128xf32>
    %258 = vector.extract_strided_slice %3 {offsets = [0, 17], sizes = [16, 1], strides = [1, 1]} : vector<16x24xf32> to vector<16x1xf32>
    %259 = vector.extract_strided_slice %1 {offsets = [0, 2], sizes = [16, 1], strides = [1, 1]} : vector<16x3xf32> to vector<16x1xf32>
    %260 = arith.subf %259, %258 : vector<16x1xf32>
    %261 = arith.mulf %260, %260 : vector<16x1xf32>
    %262 = arith.addf %254, %261 : vector<16x1xf32>
    %263 = vector.broadcast %258 : vector<16x1xf32> to vector<16x128xf32>
    %264 = arith.mulf %263, %35 : vector<16x128xf32>
    %265 = arith.addf %257, %264 : vector<16x128xf32>
    %266 = math.sqrt %262 : vector<16x1xf32>
    %267 = vector.broadcast %266 : vector<16x1xf32> to vector<16x128xf32>
    %268 = arith.mulf %267, %26 : vector<16x128xf32>
    %269 = arith.addf %265, %268 : vector<16x128xf32>
    %cst_78 = arith.constant 0.000000e+00 : f32
    %270 = vector.broadcast %cst_78 : f32 to vector<16x128xf32>
    %271 = arith.maximumf %269, %270 : vector<16x128xf32>
    %272 = arith.truncf %271 : vector<16x128xf32> to vector<16x128xbf16>
    %c0_79 = arith.constant 0 : index
    %c5 = arith.constant 5 : index
    %c0_80 = arith.constant 0 : index
    %c0_81 = arith.constant 0 : index
    %273 = vector.load %arg5[%c0_79, %c5, %c0_80, %c0_81] : memref<1x8x16x128xbf16, #tpu.memory_space<vmem>>, vector<1x1x16x128xbf16>
    %274 = vector.shape_cast %273 : vector<1x1x16x128xbf16> to vector<16x128xbf16>
    %c0_82 = arith.constant 0 : index
    %c0_83 = arith.constant 0 : index
    %275 = vector.load %arg10[%c0_82, %c0_83] : memref<128x128xbf16, #tpu.memory_space<vmem>>, vector<128x128xbf16>
    %cst_84 = arith.constant dense<0.000000e+00> : vector<16x128xf32>
    %276 = tpu.matmul %274, %275, %cst_84 {dimension_numbers = #tpu.dot_dimension_numbers<[1], [0], [0], [1], [0, 0, 1, 1], [], []>} : vector<16x128xbf16>, vector<128x128xbf16>, vector<16x128xf32> -> vector<16x128xf32>
    %c0_85 = arith.constant 0 : index
    %c0_86 = arith.constant 0 : index
    %277 = vector.load %arg11[%c0_85, %c0_86] : memref<128x128xbf16, #tpu.memory_space<vmem>>, vector<128x128xbf16>
    %cst_87 = arith.constant dense<0.000000e+00> : vector<16x128xf32>
    %278 = tpu.matmul %272, %277, %cst_87 {dimension_numbers = #tpu.dot_dimension_numbers<[1], [0], [0], [1], [0, 0, 1, 1], [], []>} : vector<16x128xbf16>, vector<128x128xbf16>, vector<16x128xf32> -> vector<16x128xf32>
    %279 = arith.addf %276, %278 : vector<16x128xf32>
    %280 = arith.addf %279, %38 : vector<16x128xf32>
    %cst_88 = arith.constant 0.000000e+00 : f32
    %281 = vector.broadcast %cst_88 : f32 to vector<16x128xf32>
    %282 = arith.maximumf %280, %281 : vector<16x128xf32>
    %283 = arith.maximumf %242, %282 : vector<16x128xf32>
    %284 = vector.extract_strided_slice %3 {offsets = [0, 18], sizes = [16, 1], strides = [1, 1]} : vector<16x24xf32> to vector<16x1xf32>
    %285 = vector.extract_strided_slice %1 {offsets = [0, 0], sizes = [16, 1], strides = [1, 1]} : vector<16x3xf32> to vector<16x1xf32>
    %286 = arith.subf %285, %284 : vector<16x1xf32>
    %287 = arith.mulf %286, %286 : vector<16x1xf32>
    %288 = vector.broadcast %284 : vector<16x1xf32> to vector<16x128xf32>
    %289 = arith.mulf %288, %29 : vector<16x128xf32>
    %290 = arith.addf %23, %289 : vector<16x128xf32>
    %291 = vector.extract_strided_slice %3 {offsets = [0, 19], sizes = [16, 1], strides = [1, 1]} : vector<16x24xf32> to vector<16x1xf32>
    %292 = vector.extract_strided_slice %1 {offsets = [0, 1], sizes = [16, 1], strides = [1, 1]} : vector<16x3xf32> to vector<16x1xf32>
    %293 = arith.subf %292, %291 : vector<16x1xf32>
    %294 = arith.mulf %293, %293 : vector<16x1xf32>
    %295 = arith.addf %287, %294 : vector<16x1xf32>
    %296 = vector.broadcast %291 : vector<16x1xf32> to vector<16x128xf32>
    %297 = arith.mulf %296, %32 : vector<16x128xf32>
    %298 = arith.addf %290, %297 : vector<16x128xf32>
    %299 = vector.extract_strided_slice %3 {offsets = [0, 20], sizes = [16, 1], strides = [1, 1]} : vector<16x24xf32> to vector<16x1xf32>
    %300 = vector.extract_strided_slice %1 {offsets = [0, 2], sizes = [16, 1], strides = [1, 1]} : vector<16x3xf32> to vector<16x1xf32>
    %301 = arith.subf %300, %299 : vector<16x1xf32>
    %302 = arith.mulf %301, %301 : vector<16x1xf32>
    %303 = arith.addf %295, %302 : vector<16x1xf32>
    %304 = vector.broadcast %299 : vector<16x1xf32> to vector<16x128xf32>
    %305 = arith.mulf %304, %35 : vector<16x128xf32>
    %306 = arith.addf %298, %305 : vector<16x128xf32>
    %307 = math.sqrt %303 : vector<16x1xf32>
    %308 = vector.broadcast %307 : vector<16x1xf32> to vector<16x128xf32>
    %309 = arith.mulf %308, %26 : vector<16x128xf32>
    %310 = arith.addf %306, %309 : vector<16x128xf32>
    %cst_89 = arith.constant 0.000000e+00 : f32
    %311 = vector.broadcast %cst_89 : f32 to vector<16x128xf32>
    %312 = arith.maximumf %310, %311 : vector<16x128xf32>
    %313 = arith.truncf %312 : vector<16x128xf32> to vector<16x128xbf16>
    %c0_90 = arith.constant 0 : index
    %c6 = arith.constant 6 : index
    %c0_91 = arith.constant 0 : index
    %c0_92 = arith.constant 0 : index
    %314 = vector.load %arg5[%c0_90, %c6, %c0_91, %c0_92] : memref<1x8x16x128xbf16, #tpu.memory_space<vmem>>, vector<1x1x16x128xbf16>
    %315 = vector.shape_cast %314 : vector<1x1x16x128xbf16> to vector<16x128xbf16>
    %c0_93 = arith.constant 0 : index
    %c0_94 = arith.constant 0 : index
    %316 = vector.load %arg10[%c0_93, %c0_94] : memref<128x128xbf16, #tpu.memory_space<vmem>>, vector<128x128xbf16>
    %cst_95 = arith.constant dense<0.000000e+00> : vector<16x128xf32>
    %317 = tpu.matmul %315, %316, %cst_95 {dimension_numbers = #tpu.dot_dimension_numbers<[1], [0], [0], [1], [0, 0, 1, 1], [], []>} : vector<16x128xbf16>, vector<128x128xbf16>, vector<16x128xf32> -> vector<16x128xf32>
    %c0_96 = arith.constant 0 : index
    %c0_97 = arith.constant 0 : index
    %318 = vector.load %arg11[%c0_96, %c0_97] : memref<128x128xbf16, #tpu.memory_space<vmem>>, vector<128x128xbf16>
    %cst_98 = arith.constant dense<0.000000e+00> : vector<16x128xf32>
    %319 = tpu.matmul %313, %318, %cst_98 {dimension_numbers = #tpu.dot_dimension_numbers<[1], [0], [0], [1], [0, 0, 1, 1], [], []>} : vector<16x128xbf16>, vector<128x128xbf16>, vector<16x128xf32> -> vector<16x128xf32>
    %320 = arith.addf %317, %319 : vector<16x128xf32>
    %321 = arith.addf %320, %38 : vector<16x128xf32>
    %cst_99 = arith.constant 0.000000e+00 : f32
    %322 = vector.broadcast %cst_99 : f32 to vector<16x128xf32>
    %323 = arith.maximumf %321, %322 : vector<16x128xf32>
    %324 = arith.maximumf %283, %323 : vector<16x128xf32>
    %325 = vector.extract_strided_slice %3 {offsets = [0, 21], sizes = [16, 1], strides = [1, 1]} : vector<16x24xf32> to vector<16x1xf32>
    %326 = vector.extract_strided_slice %1 {offsets = [0, 0], sizes = [16, 1], strides = [1, 1]} : vector<16x3xf32> to vector<16x1xf32>
    %327 = arith.subf %326, %325 : vector<16x1xf32>
    %328 = arith.mulf %327, %327 : vector<16x1xf32>
    %329 = vector.broadcast %325 : vector<16x1xf32> to vector<16x128xf32>
    %330 = arith.mulf %329, %29 : vector<16x128xf32>
    %331 = arith.addf %23, %330 : vector<16x128xf32>
    %332 = vector.extract_strided_slice %3 {offsets = [0, 22], sizes = [16, 1], strides = [1, 1]} : vector<16x24xf32> to vector<16x1xf32>
    %333 = vector.extract_strided_slice %1 {offsets = [0, 1], sizes = [16, 1], strides = [1, 1]} : vector<16x3xf32> to vector<16x1xf32>
    %334 = arith.subf %333, %332 : vector<16x1xf32>
    %335 = arith.mulf %334, %334 : vector<16x1xf32>
    %336 = arith.addf %328, %335 : vector<16x1xf32>
    %337 = vector.broadcast %332 : vector<16x1xf32> to vector<16x128xf32>
    %338 = arith.mulf %337, %32 : vector<16x128xf32>
    %339 = arith.addf %331, %338 : vector<16x128xf32>
    %340 = vector.extract_strided_slice %3 {offsets = [0, 23], sizes = [16, 1], strides = [1, 1]} : vector<16x24xf32> to vector<16x1xf32>
    %341 = vector.extract_strided_slice %1 {offsets = [0, 2], sizes = [16, 1], strides = [1, 1]} : vector<16x3xf32> to vector<16x1xf32>
    %342 = arith.subf %341, %340 : vector<16x1xf32>
    %343 = arith.mulf %342, %342 : vector<16x1xf32>
    %344 = arith.addf %336, %343 : vector<16x1xf32>
    %345 = vector.broadcast %340 : vector<16x1xf32> to vector<16x128xf32>
    %346 = arith.mulf %345, %35 : vector<16x128xf32>
    %347 = arith.addf %339, %346 : vector<16x128xf32>
    %348 = math.sqrt %344 : vector<16x1xf32>
    %349 = vector.broadcast %348 : vector<16x1xf32> to vector<16x128xf32>
    %350 = arith.mulf %349, %26 : vector<16x128xf32>
    %351 = arith.addf %347, %350 : vector<16x128xf32>
    %cst_100 = arith.constant 0.000000e+00 : f32
    %352 = vector.broadcast %cst_100 : f32 to vector<16x128xf32>
    %353 = arith.maximumf %351, %352 : vector<16x128xf32>
    %354 = arith.truncf %353 : vector<16x128xf32> to vector<16x128xbf16>
    %c0_101 = arith.constant 0 : index
    %c7 = arith.constant 7 : index
    %c0_102 = arith.constant 0 : index
    %c0_103 = arith.constant 0 : index
    %355 = vector.load %arg5[%c0_101, %c7, %c0_102, %c0_103] : memref<1x8x16x128xbf16, #tpu.memory_space<vmem>>, vector<1x1x16x128xbf16>
    %356 = vector.shape_cast %355 : vector<1x1x16x128xbf16> to vector<16x128xbf16>
    %c0_104 = arith.constant 0 : index
    %c0_105 = arith.constant 0 : index
    %357 = vector.load %arg10[%c0_104, %c0_105] : memref<128x128xbf16, #tpu.memory_space<vmem>>, vector<128x128xbf16>
    %cst_106 = arith.constant dense<0.000000e+00> : vector<16x128xf32>
    %358 = tpu.matmul %356, %357, %cst_106 {dimension_numbers = #tpu.dot_dimension_numbers<[1], [0], [0], [1], [0, 0, 1, 1], [], []>} : vector<16x128xbf16>, vector<128x128xbf16>, vector<16x128xf32> -> vector<16x128xf32>
    %c0_107 = arith.constant 0 : index
    %c0_108 = arith.constant 0 : index
    %359 = vector.load %arg11[%c0_107, %c0_108] : memref<128x128xbf16, #tpu.memory_space<vmem>>, vector<128x128xbf16>
    %cst_109 = arith.constant dense<0.000000e+00> : vector<16x128xf32>
    %360 = tpu.matmul %354, %359, %cst_109 {dimension_numbers = #tpu.dot_dimension_numbers<[1], [0], [0], [1], [0, 0, 1, 1], [], []>} : vector<16x128xbf16>, vector<128x128xbf16>, vector<16x128xf32> -> vector<16x128xf32>
    %361 = arith.addf %358, %360 : vector<16x128xf32>
    %362 = arith.addf %361, %38 : vector<16x128xf32>
    %cst_110 = arith.constant 0.000000e+00 : f32
    %363 = vector.broadcast %cst_110 : f32 to vector<16x128xf32>
    %364 = arith.maximumf %362, %363 : vector<16x128xf32>
    %365 = arith.maximumf %324, %364 : vector<16x128xf32>
    %c0_111 = arith.constant 0 : index
    %c0_112 = arith.constant 0 : index
    %c0_113 = arith.constant 0 : index
    %366 = vector.load %arg4[%c0_111, %c0_112, %c0_113] : memref<1x16x128xf32, #tpu.memory_space<vmem>>, vector<1x16x128xf32>
    %367 = vector.shape_cast %366 : vector<1x16x128xf32> to vector<16x128xf32>
    %368 = arith.addf %367, %365 : vector<16x128xf32>
    %369 = arith.truncf %368 : vector<16x128xf32> to vector<16x128xbf16>
    %c0_114 = arith.constant 0 : index
    %c0_115 = arith.constant 0 : index
    %370 = vector.load %arg13[%c0_114, %c0_115] : memref<128x128xbf16, #tpu.memory_space<vmem>>, vector<128x128xbf16>
    %cst_116 = arith.constant dense<0.000000e+00> : vector<16x128xf32>
    %371 = tpu.matmul %369, %370, %cst_116 {dimension_numbers = #tpu.dot_dimension_numbers<[1], [0], [0], [1], [0, 0, 1, 1], [], []>} : vector<16x128xbf16>, vector<128x128xbf16>, vector<16x128xf32> -> vector<16x128xf32>
    %c0_117 = arith.constant 0 : index
    %c0_118 = arith.constant 0 : index
    %372 = vector.load %arg14[%c0_117, %c0_118] : memref<1x128xf32, #tpu.memory_space<vmem>>, vector<1x128xf32>
    %373 = vector.broadcast %372 : vector<1x128xf32> to vector<16x128xf32>
    %374 = arith.addf %371, %373 : vector<16x128xf32>
    %cst_119 = arith.constant 0.000000e+00 : f32
    %375 = vector.broadcast %cst_119 : f32 to vector<16x128xf32>
    %376 = arith.maximumf %374, %375 : vector<16x128xf32>
    %c0_120 = arith.constant 0 : index
    %c0_121 = arith.constant 0 : index
    %c0_122 = arith.constant 0 : index
    %377 = vector.load %arg15[%c0_120, %c0_121, %c0_122] : memref<1x16x128xf32, #tpu.memory_space<vmem>>, vector<1x16x128xf32>
    %378 = vector.shape_cast %377 : vector<1x16x128xf32> to vector<16x128xf32>
    %379 = vector.shape_cast %376 : vector<16x128xf32> to vector<1x16x128xf32>
    tpu.vector_store %arg15[%c0_120, %c0_121, %c0_122], %379 {strides = array<i32>} : memref<1x16x128xf32, #tpu.memory_space<vmem>>, vector<1x16x128xf32>,
    return
  }
  func.func @transform_0(%arg0: i32, %arg1: i32) -> (i32, i32, i32) {
    %c0_i32 = arith.constant 0 : i32
    %c0_i32_0 = arith.constant 0 : i32
    return %arg0, %arg1, %c0_i32 : i32, i32, i32
  }
  func.func @transform_1(%arg0: i32, %arg1: i32) -> (i32, i32, i32) {
    %c0_i32 = arith.constant 0 : i32
    %c0_i32_0 = arith.constant 0 : i32
    return %arg0, %arg1, %c0_i32 : i32, i32, i32
  }
  func.func @transform_2(%arg0: i32, %arg1: i32) -> (i32, i32, i32) {
    %c0_i32 = arith.constant 0 : i32
    %c0_i32_0 = arith.constant 0 : i32
    return %arg0, %arg1, %c0_i32 : i32, i32, i32
  }
  func.func @transform_3(%arg0: i32, %arg1: i32) -> (i32, i32, i32, i32) {
    %c0_i32 = arith.constant 0 : i32
    %c0_i32_0 = arith.constant 0 : i32
    %c0_i32_1 = arith.constant 0 : i32
    return %arg0, %c0_i32, %arg1, %c0_i32_0 : i32, i32, i32, i32
  }
  func.func @transform_4(%arg0: i32, %arg1: i32) -> (i32, i32) {
    %c0_i32 = arith.constant 0 : i32
    %c0_i32_0 = arith.constant 0 : i32
    %c0_i32_1 = arith.constant 0 : i32
    return %c0_i32, %c0_i32_0 : i32, i32
  }
  func.func @transform_5(%arg0: i32, %arg1: i32) -> (i32, i32) {
    %c0_i32 = arith.constant 0 : i32
    %c0_i32_0 = arith.constant 0 : i32
    %c0_i32_1 = arith.constant 0 : i32
    return %c0_i32, %c0_i32_0 : i32, i32
  }
  func.func @transform_6(%arg0: i32, %arg1: i32) -> (i32, i32) {
    %c0_i32 = arith.constant 0 : i32
    %c0_i32_0 = arith.constant 0 : i32
    %c0_i32_1 = arith.constant 0 : i32
    return %c0_i32, %c0_i32_0 : i32, i32
  }
  func.func @transform_7(%arg0: i32, %arg1: i32) -> (i32, i32) {
    %c0_i32 = arith.constant 0 : i32
    %c0_i32_0 = arith.constant 0 : i32
    %c0_i32_1 = arith.constant 0 : i32
    return %c0_i32, %c0_i32_0 : i32, i32
  }
  func.func @transform_8(%arg0: i32, %arg1: i32) -> (i32, i32) {
    %c0_i32 = arith.constant 0 : i32
    %c0_i32_0 = arith.constant 0 : i32
    %c0_i32_1 = arith.constant 0 : i32
    return %c0_i32, %c0_i32_0 : i32, i32
  }
  func.func @transform_9(%arg0: i32, %arg1: i32) -> (i32, i32) {
    %c0_i32 = arith.constant 0 : i32
    %c0_i32_0 = arith.constant 0 : i32
    %c0_i32_1 = arith.constant 0 : i32
    return %c0_i32, %c0_i32_0 : i32, i32
  }
  func.func @transform_10(%arg0: i32, %arg1: i32) -> (i32, i32) {
    %c0_i32 = arith.constant 0 : i32
    %c0_i32_0 = arith.constant 0 : i32
    %c0_i32_1 = arith.constant 0 : i32
    return %c0_i32, %c0_i32_0 : i32, i32
  }
  func.func @transform_11(%arg0: i32, %arg1: i32) -> (i32, i32) {
    %c0_i32 = arith.constant 0 : i32
    %c0_i32_0 = arith.constant 0 : i32
    %c0_i32_1 = arith.constant 0 : i32
    return %c0_i32, %c0_i32_0 : i32, i32
  }
  func.func @transform_12(%arg0: i32, %arg1: i32) -> (i32, i32) {
    %c0_i32 = arith.constant 0 : i32
    %c0_i32_0 = arith.constant 0 : i32
    %c0_i32_1 = arith.constant 0 : i32
    return %c0_i32, %c0_i32_0 : i32, i32
  }
  func.func @transform_13(%arg0: i32, %arg1: i32) -> (i32, i32, i32) {
    %c0_i32 = arith.constant 0 : i32
    %c0_i32_0 = arith.constant 0 : i32
    return %arg0, %arg1, %c0_i32 : i32, i32, i32
  }
}

</mosaic_0001>

<bundles_post_ra>
// kernel: tpu_custom_call.1
= control target key start
LH: loop header
LB: loop body
LE: loop exit
PB: predicated region body
PF: predicated region fallthrough
CT: control target
= control target key end

     0   :  { %s5082_s0 = inlined_call_operand.vmem [shape: f32[2,16,3], index: 0, kind: input, shape index: {}]   ;;  %s5083_s1 = inlined_call_operand.vmem [shape: f32[2,16,24], index: 1, kind: input, shape index: {}]   ;;  %s5084_s2 = inlined_call_operand.hbm [shape: f32[2,16,128], index: 2, kind: input, shape index: {}]   ;;  %s5085_s3 = inlined_call_operand.hbm [shape: bf16[2,8,16,128], index: 3, kind: input, shape index: {}]   ;;  %s5086_s4 = inlined_call_operand.vmem [shape: f32[1,128], index: 4, kind: input, shape index: {}]   ;;  %s5087_s5 = inlined_call_operand.vmem [shape: f32[3,128], index: 5, kind: input, shape index: {}]   ;;  %s5088_s6 = inlined_call_operand.vmem [shape: f32[3,128], index: 6, kind: input, shape index: {}]   ;;  %s5089_s7 = inlined_call_operand.vmem [shape: f32[1,128], index: 7, kind: input, shape index: {}]   ;;  %s5090_s8 = inlined_call_operand.hbm [shape: bf16[128,128], index: 8, kind: input, shape index: {}]   ;;  %s5091_s9 = inlined_call_operand.hbm [shape: bf16[128,128], index: 9, kind: input, shape index: {}]   ;;  %s5092_s10 = inlined_call_operand.vmem [shape: f32[1,128], index: 10, kind: input, shape index: {}]   ;;  %s5093_s11 = inlined_call_operand.hbm [shape: bf16[128,128], index: 11, kind: input, shape index: {}]   ;;  %s5094_s12 = inlined_call_operand.vmem [shape: f32[1,128], index: 12, kind: input, shape index: {}]   ;;  %s5095_s13 = inlined_call_operand.hbm [shape: f32[2,16,128], index: 13, kind: output, shape index: {}]  }
   0x1   :  { %5109 = sst [smem:[#allocation24_spill]] %s5084_s2 }
   0x2   :  { %5110 = sst [smem:[#allocation25_spill]] %s5086_s4 }
   0x3   :  { %5111 = sst [smem:[#allocation26_spill]] %s5090_s8 }
   0x4   :  { %5112 = sst [smem:[#allocation27_spill]] %s5091_s9 }
   0x5   :  { %5113 = sst [smem:[#allocation28_spill]] %s5092_s10 }
   0x6   :  { %5114 = sst [smem:[#allocation29_spill]] %s5093_s11 }
   0x7   :  { %5115 = sst [smem:[#allocation30_spill]] %s5094_s12 }
   0x8   :  { %5116 = sst [smem:[#allocation31_spill]] %s5095_s13 }
   0x9   :  { %18 = vsyncpa [#allocation3], 0 }
   0xa   :  { %20 = vsyncpa [#allocation3 + $0x1], 0 }
   0xb   :  { %21 = vsyncpa [#allocation6], 0 }
   0xc   :  { %23 = vsyncpa [#allocation6 + $0x1], 0 }
   0xd   :  { %24 = vsyncpa [#allocation9], 0 }
   0xe   :  { %25 = vsyncpa [#allocation4], 0 }
   0xf   :  { %27 = vsyncpa [#allocation4 + $0x1], 0  ;;  %s3916_s25 = smov 0   ;;  %s3918_s26 = smov 0  }
  0x10   :  { %s3920_s27 = smov 0   ;;  %s3922_s28 = smov 0  }
  0x11   :  { %s3924_s29 = smov 0   ;;  %s3926_s30 = smov 0  }
  0x12 LB: > { %5117 = sst [smem:[#allocation17_spill]] %s3777_s25  ;;  %s3947_s14 = sadd.s32 4294967295, %s3797_s30   ;;  %s3797_s30 = sphi %s3926_s30, %s33_s30   ;;  %s3793_s29 = sphi %s3924_s29, %s5155_s29   ;;  %s3789_s28 = sphi %s3922_s28, %s5154_s28   ;;  %s3785_s27 = sphi %s3920_s27, %s5150_s27   ;;  %s3781_s26 = sphi %s3918_s26, %s5153_s26   ;;  %s3777_s25 = sphi %s3916_s25, %s5152_s25  }
  0x13   : > { %5118 = sst [smem:[#allocation18_spill]] %s3785_s27  ;;  %s2705_s15 = sadd.s32 4294967294, %s3797_s30  }
  0x14   : > { %5119 = sst [smem:[#allocation19_spill]] %s3797_s30  ;;  %p123_p0 = scmp.ne.s32.totalorder %s3781_s26, %s3777_s25 }
  0x15   : > { %p5099_p1 = scmp.eq.s32.totalorder %s3947_s14, 0  ;;  %p366_p2 = scmp.eq.s32.totalorder %s3947_s14, 1 }
  0x16   : > { %p372_p3 = scmp.eq.s32.totalorder %s2705_s15, 1  ;;  %p2706_p5 = scmp.ge.s32.totalorder %s3797_s30, 1 }
  0x17   : > { %p3956_p4 = por %p5099_p1, %p123_p0  ;;  %p379_p7 = scmp.lt.s32.totalorder %s3797_s30, 3 }
  0x18   : > { %p3961_p6 = por %p372_p3, %p123_p0  ;;  %s3799_s19 = smov [#allocation7]  }
  0x19   : > { %p3966_p8 = pnand %p2706_p5, %p379_p7  ;;  %s403_s20 = sshll.u32 %s3799_s19, 4  ;;  %s404_s20 = int_to_ptr.vmem [resolvable:$true] %s403_s20 }
  0x1a   : > { %s5121_s17 = scalar_select %p3961_p6, 1, 0 }
  0x1b   : > { %p3305_p9 = pneg %p3966_p8  ;;  %s3800_s22 = smov [#allocation8]  }
  0x1c   : > { %5122 = sst [smem:[#allocation20_spill]] %s5121_s17  ;;  %s416_s23 = sshll.u32 %s3800_s22, 4  ;;  %s417_s23 = int_to_ptr.vmem [resolvable:$true] %s416_s23 }
  0x1d   : > { %p3975_p11 = pnand %p3305_p9, %p5099_p1  ;;  %s3801_s24 = smov [#allocation10]  }
  0x1e   : > { %s432_s15 = sshll.u32 %s3801_s24, 4  ;;  %s3582_s17 = scalar_lea.vmem %s404_s20, 1024  ;;  %s433_s15 = int_to_ptr.vmem [resolvable:$true] %s432_s15 }
  0x1f   : > { %p3573_p12 = pneg %p3975_p11  ;;  %p3583_p13 = scmp.ne.s32.totalorder %s404_s20, %s3582_s17 }
  0x20   : > { %p3590_p5 = scmp.lt.s32.totalorder %s404_s20, %s404_s20  ;;  %p3591_p7 = scmp.lt.s32.totalorder %s3582_s17, %s3582_s17 }
  0x21   : > { %p3585_p0 = pnand %p3583_p13, %p3573_p12 }
  0x22   : > { %p3592_p9 = por %p3591_p7, %p3590_p5 }
  0x23   : > { %p3586_p3 = pneg %p3585_p0 }
  0x25   : > { %p3593_p10 = pnand %p3592_p9, %p3586_p3 }
  0x27   : > { %3596 = shalt.err (!%p3593_p10)
}
  0x28   : > { %s5100_s19 = smov 64   ;;  %s5101_s22 = smov 4  }
  0x29   : > { %s5125_s8 = sld [smem:[#allocation26_spill]]  ;;  %s3608_s13 = scalar_lea.vmem %s417_s23, 1024 }
  0x2a   : > { %p3609_p13 = scmp.ne.s32.totalorder %s417_s23, %s3608_s13  ;;  %p3616_p3 = scmp.lt.s32.totalorder %s417_s23, %s417_s23 }
  0x2b   : > { %p3617_p10 = scmp.lt.s32.totalorder %s3608_s13, %s3608_s13 }
  0x2c   : > { %p3611_p0 = pnand %p3609_p13, %p3573_p12 }
  0x2d   : > { %p3618_p7 = por %p3617_p10, %p3616_p3 }
  0x2e   : > { %p3612_p5 = pneg %p3611_p0 }
  0x2f   : > { %3308 = dma.hbm_to_vmem [thread:$0]  (!%p3975_p11), %s5125_s8, 1024, %s404_s20, [#allocation6], %s5100_s19, %s5100_s19, %s5101_s22  }
  0x30   : > { %p3619_p9 = pnand %p3618_p7, %p3612_p5 }
  0x32   : > { %3622 = shalt.err (!%p3619_p9)
}
  0x33   : > { %s5126_s9 = sld [smem:[#allocation27_spill]]  ;;  %s3634_s25 = scalar_lea.vmem %s433_s15, 1024 }
  0x34   : > { %p3635_p1 = scmp.ne.s32.totalorder %s433_s15, %s3634_s25  ;;  %p3642_p3 = scmp.lt.s32.totalorder %s433_s15, %s433_s15 }
  0x35   : > { %p3643_p5 = scmp.lt.s32.totalorder %s3634_s25, %s3634_s25 }
  0x36   : > { %p3637_p13 = pnand %p3635_p1, %p3573_p12 }
  0x37   : > { %p3644_p10 = por %p3643_p5, %p3642_p3 }
  0x38   : > { %p3638_p0 = pneg %p3637_p13 }
  0x39   : > { %3311 = dma.hbm_to_vmem [thread:$0]  (!%p3975_p11), %s5126_s9, 1024, %s417_s23, [#allocation9], %s5100_s19, %s5100_s19, %s5101_s22  }
  0x3a   : > { %p3645_p7 = pnand %p3644_p10, %p3638_p0 }
  0x3c   : > { %3648 = shalt.err (!%p3645_p7)
}
  0x3d   : > { %s5127_s11 = sld [smem:[#allocation29_spill]]  ;;  %s110_s20 = sadd.s32 1, %s3785_s27 }
  0x3e   : > { %s45_s21 = sadd.s32 1, %s3793_s29  ;;  %p117_p1 = scmp.ne.s32.totalorder %s3785_s27, %s3781_s26 }
  0x3f   : > { %p47_p12 = scmp.ge.s32.totalorder %s45_s21, 2  ;;  %p118_p9 = scmp.eq.s32.totalorder %s3797_s30, 0 }
  0x40   : > { %p4021_p13 = por %p366_p2, %p117_p1  ;;  %p3329_p0 = scmp.lt.s32.totalorder %s3797_s30, 2 }
  0x41   : > { %s5157_s21 = smov (%p47_p12, %s45_s21), 0  ;;  %p119_p3 = por %p118_p9, %p117_p1 }
  0x42   : > { %s5128_s23 = scalar_select %p4021_p13, 1, 0 }
  0x43   : > { %3314 = dma.hbm_to_vmem [thread:$0]  (!%p3975_p11), %s5127_s11, 1024, %s433_s15, [#allocation9], %s5100_s19, %s5100_s19, %s5101_s22  }
  0x44   : > { %5129 = sst [smem:[#allocation21_spill]] %s5128_s23  ;;  %s4029_s24 = sand.u32 1, %s3785_s27  }
  0x45   : > { %5130 = sst [smem:[#allocation22_spill]] %s5157_s21  ;;  %s105_s15 = ssub.s32 %s3793_s29, %s5157_s21 }
  0x46   : > { %p108_p11 = scmp.eq.s32.totalorder %s105_s15, 0  ;;  %s2711_s17 = sshll.u32 %s4029_s24, 4 }
  0x47   : > { %s2789_s25 = sshll.u32 %s3793_s29, 8  ;;  %s5132_s2 = sld [smem:[#allocation24_spill]] }
  0x48   : > { %s4036_s12 = scalar_select %p108_p11, %s3785_s27, %s110_s20  }
  0x49   : > { %s479_s8 = scalar_lea.vmem [#allocation2], %s2711_s17  ;;  %p4043_p2 = pnand %p3329_p0, %p119_p3 }
  0x4a   : > { %5131 = sst [smem:[#allocation23_spill]] %s4036_s12  ;;  %s488_s9 = sshll.u32 %s479_s8, 4  ;;  %s489_s9 = int_to_ptr.vmem [resolvable:$true] %s488_s9 }
  0x4b   : > { %s498_s21 = sand.u32 1, %s3797_s30   ;;  %s476_s15 = scalar_lea.sflag [#allocation3], %s4029_s24 }
  0x4c   : > { %p3651_p5 = pneg %p4043_p2  ;;  %s3662_s20 = scalar_lea.vmem %s489_s9, 256 }
  0x4d   : > { %s487_s22 = scalar_lea.hbm %s5132_s2, %s2789_s25  ;;  %p3663_p10 = scmp.ne.s32.totalorder %s489_s9, %s3662_s20 }
  0x4e   : > { %s3804_s19 = smov [#allocation2]  }
  0x4f   : > { %p3665_p7 = pnand %p3663_p10, %p3651_p5  ;;  %s3667_s8 = sshll.u32 %s3804_s19, 4  ;;  %s3668_s8 = int_to_ptr.vmem [resolvable:$false] %s3667_s8 }
  0x50   : > { %s3669_s17 = scalar_lea.vmem %s3668_s8, 512  ;;  %p3670_p12 = scmp.lt.s32.totalorder %s489_s9, %s3668_s8 }
  0x51   : > { %p3666_p1 = pneg %p3665_p7  ;;  %p3671_p9 = scmp.lt.s32.totalorder %s3669_s17, %s3662_s20 }
  0x53   : > { %p3672_p0 = por %p3671_p9, %p3670_p12 }
  0x55   : > { %p3673_p3 = pnand %p3672_p0, %p3666_p1 }
  0x57   : > { %3676 = shalt.err (!%p3673_p3)
}
  0x58   : > { %s3805_s25 = smov 128   ;;  %s3806_s13 = smov 8  }
  0x59   : > { %3318 = dma.hbm_to_vmem [thread:$0]  (!%p4043_p2), %s487_s22, 256, %s489_s9, %s476_s15, %s3805_s25, %s3805_s25, %s3806_s13  }
  0x5a   : > { %s2714_s2 = sshll.u32 %s4029_s24, 6  ;;  %s2790_s12 = sshll.u32 %s3793_s29, 10 }
  0x5b   : > { %s510_s19 = scalar_lea.hbm %s5085_s3, %s2790_s12  ;;  %s502_s23 = scalar_lea.vmem [#allocation5], %s2714_s2 }
  0x5c   : > { %s511_s8 = sshll.u32 %s502_s23, 4  ;;  %s499_s20 = scalar_lea.sflag [#allocation6], %s498_s21  ;;  %s512_s8 = int_to_ptr.vmem [resolvable:$true] %s511_s8 }
  0x5d   : > { %s3690_s17 = scalar_lea.vmem %s512_s8, 1024  ;;  %s3807_s10 = smov [#allocation5]  }
  0x5e   : > { %p3691_p11 = scmp.ne.s32.totalorder %s512_s8, %s3690_s17  ;;  %s3695_s4 = sshll.u32 %s3807_s10, 4  ;;  %s3696_s4 = int_to_ptr.vmem [resolvable:$false] %s3695_s4 }
  0x5f   : > { %s3697_s9 = scalar_lea.vmem %s3696_s4, 2048  ;;  %p3698_p1 = scmp.lt.s32.totalorder %s512_s8, %s3696_s4 }
  0x60   : > { %p3693_p10 = pnand %p3691_p11, %p3651_p5  ;;  %p3699_p12 = scmp.lt.s32.totalorder %s3697_s9, %s3690_s17 }
  0x62   : > { %p3694_p7 = pneg %p3693_p10  ;;  %p3700_p9 = por %p3699_p12, %p3698_p1 }
  0x64   : > { %p3701_p0 = pnand %p3700_p9, %p3694_p7 }
  0x66   : > { %3704 = shalt.err (!%p3701_p0)
}
  0x67   : > { %s5134_s2 = smov 4   ;;  %s5135_s27 = smov 64  }
  0x68   : > { %3321 = dma.hbm_to_vmem [thread:$0]  (!%p4043_p2), %s510_s19, 1024, %s512_s8, %s499_s20, %s5135_s27, %s5135_s27, %s5134_s2  }
  0x69   : > { %523 = sbr.rel (%p3966_p8) target bundleno = 1333 (0x535), region = 72  ;;  %s4072_s30 = sand.u32 (!%p3966_p8), 1, %s3781_s26  }
  0x6a   : > { %s2718_s4 = sshll.u32 (!%p3966_p8), %s4072_s30, 4  ;;  %s526_s10 = scalar_lea.sflag (!%p3966_p8), [#allocation3], %s4072_s30 }
  0x6b   : > { %s4078_s22 = scalar_lea.vmem (!%p3966_p8), [#allocation2], %s2718_s4 }
  0x6e   : > { %3756 = dma.done.wait (%p3956_p4), %s526_s10, 256  }
  0x6f   : > { %3758 = vsyncadd (%p3956_p4), %s526_s10, 4294967040  ;;  %s534_s11 = sand.u32 1, %s3947_s14   ;;  %s2719_s18 = sshll.u32 %s4072_s30, 6 }
  0x70   : > { %s535_s21 = scalar_lea.sflag [#allocation6], %s534_s11  ;;  %s4086_s23 = scalar_lea.vmem [#allocation5], %s2719_s18 }
  0x71   : > { %3760 = dma.done.wait (%p3956_p4), %s535_s21, 1024  }
  0x72   : > { %3762 = vsyncadd (%p3956_p4), %s535_s21, 4294966272  ;;  %p5136_p8 = scmp.eq.s32.totalorder %s3947_s14, 0 }
  0x74   : > { %3764 = dma.done.wait (%p5136_p8), [#allocation6], 1024   ;;  %p5137_p2 = pmov %p5136_p8 }
  0x76   : > { %3766 = vsyncadd (%p5137_p2), [#allocation6], 4294966272  ;;  %p5138_p5 = pmov %p5137_p2 }
  0x77   : > { %p5139_p3 = pmov %p5137_p2 }
  0x78   : > { %3768 = dma.done.wait (%p5138_p5), [#allocation9], 2048  }
  0x79   : > { %3770 = vsyncadd (%p5139_p3), [#allocation9], 4294965248  ;;  %p617_p11 = scmp.lt.s32.totalorder %s3789_s28, 1  ;;  %s3808_s14 = smov 125   ;;  %v3810_v8 = vmov 1   ;;  %v3812_v9 = vmov 0  }
  0x7a   : > { %s3809_s20 = smov 127   ;;  %3428 = vset.pattern.permute.xlu0 %v3810_v8  ;;  %s3811_s17 = smov 126   ;;  %3426 = vset.pattern.permute.xlu1 %v3812_v9  ;;  %v3816_v22 = vmov 2   ;;  %v4192_v27 = vld [vmem:[#allocation8 + $0x38] sm:$0xff]   ;;  %v3817_v29 = vmov 0.0   ;;  %v4200_v30 = vld [vmem:[#allocation8 + $0x30] sm:$0xff]  }
  0x7b   : > { %s618_s24 = scalar_select %p617_p11, %s3789_s28, 1  ;;  %v4194_v28 = vld [vmem:[#allocation7 + $0x38] sm:$0xff]   ;;  %2947 = vmatprep.subr.bf16.mxu0 %v3817_v29  ;;  %2967 = vmatprep.subr.bf16.mxu1 %v3817_v29  ;;  %v4202_v31 = vld [vmem:[#allocation7 + $0x30] sm:$0xff]   ;;  %v4208_v32 = vld [vmem:[#allocation8 + $0x28] sm:$0xff]   ;;  %vm3819_vm4 = vmmov 0  }
  0x7c   : > { %s3813_s9 = smov 122   ;;  %s3814_s2 = smov 119   ;;  %2948 = vmatpush3.bf16.msra.mxu0 %v4192_v27  ;;  %2968 = vmatpush3.bf16.msra.mxu1 %v4194_v28  ;;  %v4210_v33 = vld [vmem:[#allocation7 + $0x28] sm:$0xff]   ;;  %v4222_v39 = vld [vmem:[#allocation8 + $0x20] sm:$0xff]   ;;  %v4228_v41 = vld [vmem:[#allocation8 + $0x18] sm:$0xff]  }
  0x7d   : > { %s2791_s12 = sshll.u32 %s618_s24, 4  ;;  %s3815_s27 = smov 116   ;;  %2949 = vmatprep.subr.bf16.mxu0 %v3817_v29  ;;  %2969 = vmatprep.subr.bf16.mxu1 %v3817_v29  ;;  %v4224_v40 = vld [vmem:[#allocation7 + $0x20] sm:$0xff]   ;;  %v4230_v42 = vld [vmem:[#allocation7 + $0x18] sm:$0xff]   ;;  %v4236_v47 = vld [vmem:[#allocation8 + $0x10] sm:$0xff]  }
  0x7e   : > { %s4105_s25 = scalar_lea.vmem %s5083_s1, %s2791_s12  ;;  %s4110_s8 = scalar_lea.vmem %s5082_s0, %s2791_s12  ;;  %v4238_v48 = vld [vmem:[#allocation7 + $0x10] sm:$0xff]   ;;  %v4254_v60 = vld [vmem:[#allocation8 + $0x8] sm:$0xff]   ;;  %2963 = vmatprep.mubr.msk.bf16.mxu0 %vm3819_vm4, %v3817_v29  ;;  %2983 = vmatprep.mubr.msk.bf16.mxu1 %vm3819_vm4, %v3817_v29 }
  0x7f   : > { %v4113_v0 = vld [vmem:[%s4105_s25] sm:$0xff]  ;;  %v4116_v1 = vld [vmem:[%s4105_s25 + $0x8] sm:$0xff]  ;;  %s3820_s10 = smov 113   ;;  %s3823_s11 = smov 110  }
  0x80   : > { %v4119_v2 = vld [vmem:[%s4110_s8] sm:$0xff]  ;;  %1046 = vrot.lane.b32.xlu0 %v4113_v0, %s3808_s14  ;;  %v4125_v4 = vld [vmem:[%s4110_s8 + $0x8] sm:$0xff]  ;;  %2950 = vmatpush3.bf16.msra.mxu0 %v4200_v30  ;;  %s5140_s24 = sld [smem:[#allocation25_spill]]  ;;  %s3828_s12 = smov 107  }
  0x81   : > { %v733_v3 = vsub.f32 %v4119_v2, %v4113_v0  ;;  %v734_v5 = vsub.f32 %v4125_v4, %v4116_v1  ;;  %2970 = vmatpush3.bf16.msra.mxu1 %v4202_v31  ;;  %2951 = vmatprep.subr.bf16.mxu0 %v3817_v29  ;;  %v4256_v61 = vld [vmem:[#allocation7 + $0x8] sm:$0xff]  }
  0x82   : > { %2971 = vmatprep.subr.bf16.mxu1 %v3817_v29 }
  0x83   : > { %v4129_v6 = vmul.f32 %v733_v3, %v733_v3  ;;  %v4134_v7 = vmul.f32 %v734_v5, %v734_v5 }
  0x84   : > { %1048 = vrot.lane.b32.xlu0 %v4116_v1, %s3808_s14  ;;  %2952 = vmatpush3.bf16.msra.mxu0 %v4208_v32 }
  0x85   : > { %753 = vrot.lane.b32.xlu1 %v4129_v6, %s3809_s20  ;;  %2972 = vmatpush3.bf16.msra.mxu1 %v4210_v33 }
  0x86   : > { %2953 = vmatprep.subr.bf16.mxu0 %v3817_v29  ;;  %2973 = vmatprep.subr.bf16.mxu1 %v3817_v29 }
  0x88   : > { %773 = vrot.lane.b32.xlu0 %v4129_v6, %s3811_s17  ;;  %2954 = vmatpush3.bf16.msra.mxu0 %v4222_v39 }
  0x89   : > { %755 = vrot.lane.b32.xlu1 %v4134_v7, %s3809_s20  ;;  %2974 = vmatpush3.bf16.msra.mxu1 %v4224_v40 }
  0x8a   : > { %2955 = vmatprep.subr.bf16.mxu0 %v3817_v29  ;;  %2975 = vmatprep.subr.bf16.mxu1 %v3817_v29 }
  0x8c   : > { %1238 = vrot.lane.b32.xlu0 %v4113_v0, %s3813_s9  ;;  %2956 = vmatpush3.bf16.msra.mxu0 %v4228_v41 }
  0x8d   : > { %775 = vrot.lane.b32.xlu1 %v4134_v7, %s3811_s17  ;;  %2976 = vmatpush3.bf16.msra.mxu1 %v4230_v42 }
  0x8e   : > { %2957 = vmatprep.subr.bf16.mxu0 %v3817_v29  ;;  %2977 = vmatprep.subr.bf16.mxu1 %v3817_v29 }
  0x90   : > { %2958 = vmatpush3.bf16.msra.mxu0 %v4236_v47 }
  0x91   : > { %1240 = vrot.lane.b32.xlu1 %v4116_v1, %s3813_s9  ;;  %2978 = vmatpush3.bf16.msra.mxu1 %v4238_v48 }
  0x92   : > { %2959 = vmatprep.subr.bf16.mxu0 %v3817_v29  ;;  %2979 = vmatprep.subr.bf16.mxu1 %v3817_v29 }
  0x94   : > { %2960 = vmatpush3.bf16.msra.mxu0 %v4254_v60 }
  0x95   : > { %2980 = vmatpush3.bf16.msra.mxu1 %v4256_v61  ;;  %2961 = vmatprep.subr.bf16.mxu0 %v3817_v29 }
  0x96   : > { %2981 = vmatprep.subr.bf16.mxu1 %v3817_v29 }
  0xf2   : > { %v1047_v10 = vpop.permute.xlu0 %1046 }
  0xf3   : > { %v1052_v11 = vsub.f32 %v4119_v2, %v1047_v10  ;;  %v4270_v10 = vld [vmem:[#allocation8] sm:$0xff]  }
  0xf4   : > { %2962 = vmatpush3.bf16.msra.mxu0 %v4270_v10 }
  0xf5   : > { %v4146_v12 = vmul.f32 %v1052_v11, %v1052_v11  ;;  %v4272_v11 = vld [vmem:[#allocation7] sm:$0xff]   ;;  %2987 = vmatprep.subr.bf16.mxu0 %v3817_v29 }
  0xf6   : > { %v1049_v13 = vpop.permute.xlu0 %1048  ;;  %2982 = vmatpush3.bf16.msra.mxu1 %v4272_v11 }
  0xf7   : > { %v1053_v14 = vsub.f32 %v4125_v4, %v1049_v13  ;;  %1070 = vrot.lane.b32.xlu0 %v4146_v12, %s3809_s20  ;;  %v754_v18 = vpop.permute.xlu1 %753  ;;  %3007 = vmatprep.subr.bf16.mxu1 %v3817_v29 }
  0xf8   : > { %v759_v34 = vadd.f32 %v754_v18, %v4129_v6 }
  0xf9   : > { %v4151_v15 = vmul.f32 %v1053_v14, %v1053_v14  ;;  %v3499_v14 = vld [vmem:[%s4086_s23] sm:$0xff]  }
  0xfa   : > { %v774_v16 = vpop.permute.xlu0 %773  ;;  %2984 = vmatmul.mubr.bf16.vlgmr.msra.gmra.mxu1 %v3499_v14 }
  0xfb   : > { %1090 = vrot.lane.b32.xlu0 %v4146_v12, %s3811_s17  ;;  %1072 = vrot.lane.b32.xlu1 %v4151_v15, %s3809_s20  ;;  %v756_v21 = vpop.permute.xlu1 %755  ;;  %v779_v36 = vadd.f32 %v774_v16, %v759_v34  ;;  %v3818_v16 = vmov 3  }
  0xfc   : > { %v760_v35 = vadd.f32 %v756_v21, %v4134_v7  ;;  %3008 = vmatpush3.bf16.msra.mxu1 %v4194_v28  ;;  %3023 = vmatprep.mubr.msk.bf16.mxu1 %vm3819_vm4, %v3817_v29 }
  0xfd   : > { %3515 = vrsqrt.f32 %v779_v36  ;;  %vm795_vm1 = vcmp.eq.f32.partialorder %v779_v36, inf  ;;  %v798_v59 = vand.u32 2147483648, %v779_v36  ;;  %vm797_vm3 = vcmp.eq.f32.partialorder %v779_v36, 0.0  ;;  %3009 = vmatprep.subr.bf16.mxu1 %v3817_v29 }
  0xfe   : > { %v1239_v17 = vpop.permute.xlu0 %1238 }
  0xff   : > { %1430 = vrot.lane.b32.xlu0 %v4113_v0, %s3814_s2  ;;  %1432 = vrot.lane.b32.xlu1 %v4116_v1, %s3814_s2  ;;  %v1244_v19 = vsub.f32 %v4119_v2, %v1239_v17  ;;  %v776_v23 = vpop.permute.xlu1 %775 }
 0x100   : > { %v780_v37 = vadd.f32 %v776_v23, %v760_v35  ;;  %3010 = vmatpush3.bf16.msra.mxu1 %v4202_v31  ;;  %v3821_v23 = vmov 4  }
 0x101   : > { %v4170_v20 = vmul.f32 %v1244_v19, %v1244_v19  ;;  %3011 = vmatprep.subr.bf16.mxu1 %v3817_v29 }
 0x102   : > { %3517 = vrsqrt.f32 %v780_v37  ;;  %vm802_vm0 = vcmp.eq.f32.partialorder %v780_v37, inf  ;;  %v805_v58 = vand.u32 2147483648, %v780_v37  ;;  %vm804_vm2 = vcmp.eq.f32.partialorder %v780_v37, 0.0 }
 0x103   : > { %1622 = vrot.lane.b32.xlu0 %v4113_v0, %s3815_s27  ;;  %1624 = vrot.lane.b32.xlu1 %v4116_v1, %s3815_s27  ;;  %v1241_v24 = vpop.permute.xlu1 %1240 }
 0x104   : > { %v1245_v25 = vsub.f32 %v4125_v4, %v1241_v24  ;;  %v3822_v24 = vmov 5   ;;  %3012 = vmatpush3.bf16.msra.mxu1 %v4210_v33 }
 0x105   : > { %3013 = vmatprep.subr.bf16.mxu1 %v3817_v29 }
 0x106   : > { %v4183_v26 = vmul.f32 %v1245_v25, %v1245_v25 }
 0x107   : > { %676 = vperm.xlu0 %3428, %v4125_v4   ;;  %1092 = vrot.lane.b32.xlu1 %v4151_v15, %s3811_s17 }
 0x108   : > { %3014 = vmatpush3.bf16.msra.mxu1 %v4224_v40 }
 0x109   : > { %3015 = vmatprep.subr.bf16.mxu1 %v3817_v29 }
 0x10a   : > { %v3516_v45 = vpop.eup %3515 }
 0x10b   : > { %766 = vperm.xlu0 %3428, %v4116_v1   ;;  %653 = vperm.xlu1 %3426, %v4125_v4   ;;  %v794_v54 = vmul.f32 %v3516_v45, %v779_v36 }
 0x10c   : > { %3016 = vmatpush3.bf16.msra.mxu1 %v4230_v42 }
 0x10d   : > { %v796_v63 = vsel %vm795_vm1, %v779_v36, %v794_v54  ;;  %3017 = vmatprep.subr.bf16.mxu1 %v3817_v29  ;;  %v3824_v54 = vmov 6  }
 0x10e   : > { %v799_v7 = vsel %vm797_vm3, %v798_v59, %v796_v63 }
 0x10f   : > { %3432 = vset.pattern.permute.xlu0 %v3812_v9  ;;  %3427 = vset.pattern.permute.xlu1 %v3810_v8  ;;  %v3518_v46 = vpop.eup %3517 }
 0x110   : > { %648 = vperm.xlu0 %3432, %v4119_v2   ;;  %672 = vperm.xlu1 %3427, %v4119_v2   ;;  %v801_v53 = vmul.f32 %v3518_v46, %v780_v37 }
 0x111   : > { %3018 = vmatpush3.bf16.msra.mxu1 %v4238_v48 }
 0x112   : > { %v803_v62 = vsel %vm802_vm0, %v780_v37, %v801_v53  ;;  %3019 = vmatprep.subr.bf16.mxu1 %v3817_v29 }
 0x113   : > { %v806_v6 = vsel %vm804_vm2, %v805_v58, %v803_v62 }
 0x114   : > { %3429 = vset.pattern.permute.xlu1 %v3816_v22  ;;  %1262 = vrot.lane.b32.xlu0 %v4170_v20, %s3809_s20 }
 0x115   : > { %689 = vperm.xlu1 %3429, %v4119_v2   ;;  %3020 = vmatpush3.bf16.msra.mxu1 %v4256_v61 }
 0x116   : > { %3021 = vmatprep.subr.bf16.mxu1 %v3817_v29 }
 0x118   : > { %1282 = vrot.lane.b32.xlu0 %v4170_v20, %s3811_s17 }
 0x119   : > { %693 = vperm.xlu1 %3429, %v4125_v4   ;;  %3022 = vmatpush3.bf16.msra.mxu1 %v4272_v11 }
 0x11a   : > { %3047 = vmatprep.subr.bf16.mxu1 %v3817_v29 }
 0x11c   : > { %739 = vperm.xlu0 %3432, %v4113_v0  }
 0x11d   : > { %3430 = vset.pattern.permute.xlu1 %v3812_v9 }
 0x11e   : > { %744 = vperm.xlu1 %3430, %v4116_v1  }
 0x122   : > { %3431 = vset.pattern.permute.xlu1 %v3810_v8 }
 0x123   : > { %762 = vperm.xlu1 %3431, %v4113_v0  }
 0x127   : > { %1264 = vrot.lane.b32.xlu1 %v4183_v26, %s3809_s20 }
 0x128   : > { %3433 = vset.pattern.permute.xlu1 %v3816_v22 }
 0x12b   : > { %1284 = vrot.lane.b32.xlu1 %v4183_v26, %s3811_s17 }
 0x12f   : > { %782 = vperm.xlu1 %3433, %v4113_v0  }
 0x133   : > { %786 = vperm.xlu1 %3433, %v4116_v1  }
 0x137   : > { %3434 = vset.pattern.permute.xlu1 %v3812_v9 }
 0x169   : > { %v4220_v38 = vpop.permute.xlu0 %1070 }
 0x16d   : > { %v1091_v43 = vpop.permute.xlu0 %1090  ;;  %v1073_v44 = vpop.permute.xlu1 %1072 }
 0x16e   : > { %v1077_v3 = vadd.f32 %v1073_v44, %v4151_v15  ;;  %v1076_v15 = vadd.f32 %v4220_v38, %v4146_v12 }
 0x170   : > { %v4286_v17 = vadd.f32 %v1091_v43, %v1076_v15 }
 0x171   : > { %v1431_v49 = vpop.permute.xlu0 %1430  ;;  %v1433_v50 = vpop.permute.xlu1 %1432 }
 0x172   : > { %v1436_v51 = vsub.f32 %v4119_v2, %v1431_v49  ;;  %v1437_v52 = vsub.f32 %v4125_v4, %v1433_v50  ;;  %vm1112_vm7 = vcmp.eq.f32.partialorder %v4286_v17, inf  ;;  %v1115_v62 = vand.u32 2147483648, %v4286_v17 }
 0x173   : > { %vm1114_vm8 = vcmp.eq.f32.partialorder %v4286_v17, 0.0 }
 0x174   : > { %v4246_v55 = vmul.f32 %v1436_v51, %v1436_v51  ;;  %v4248_v56 = vmul.f32 %v1437_v52, %v1437_v52 }
 0x175   : > { %v4252_v57 = vpop.permute.xlu1 %1624  ;;  %v1623_v13 = vpop.permute.xlu0 %1622 }
 0x176   : > { %1454 = vrot.lane.b32.xlu1 %v4246_v55, %s3809_s20  ;;  %1456 = vrot.lane.b32.xlu0 %v4248_v56, %s3809_s20  ;;  %v1628_v21 = vsub.f32 %v4119_v2, %v1623_v13 }
 0x178   : > { %v4310_v25 = vmul.f32 %v1628_v21, %v1628_v21 }
 0x179   : > { %v1093_v5 = vpop.permute.xlu1 %1092 }
 0x17a   : > { %v4268_v8 = vadd.f32 %v1093_v5, %v1077_v3  ;;  %814 = vperm.xlu1 %3434, %v806_v6   ;;  %809 = vperm.xlu0 %3432, %v799_v7   ;;  %v3825_v5 = vmov 7   ;;  %v3500_v6 = vld [vmem:[%s4086_s23 + $0x8] sm:$0xff]  }
 0x17b   : > { %3024 = vmatmul.mubr.bf16.vlgmr.msra.gmra.mxu1 %v3500_v6 }
 0x17c   : > { %3519 = vrsqrt.f32 %v4268_v8  ;;  %vm1119_vm5 = vcmp.eq.f32.partialorder %v4268_v8, inf  ;;  %v1122_v44 = vand.u32 2147483648, %v4268_v8  ;;  %vm1121_vm6 = vcmp.eq.f32.partialorder %v4268_v8, 0.0  ;;  %3048 = vmatpush3.bf16.msra.mxu1 %v4194_v28  ;;  %3063 = vmatprep.mubr.msk.bf16.mxu1 %vm3819_vm4, %v3817_v29 }
 0x17d   : > { %3521 = vrsqrt.f32 %v4286_v17  ;;  %3049 = vmatprep.subr.bf16.mxu1 %v3817_v29 }
 0x17e   : > { %1474 = vrot.lane.b32.xlu1 %v4246_v55, %s3811_s17  ;;  %1476 = vrot.lane.b32.xlu0 %v4248_v56, %s3811_s17 }
 0x17f   : > { %3435 = vset.pattern.permute.xlu1 %v3818_v16  ;;  %3436 = vset.pattern.permute.xlu0 %v3818_v16 }
 0x180   : > { %3050 = vmatpush3.bf16.msra.mxu1 %v4202_v31 }
 0x181   : > { %3051 = vmatprep.subr.bf16.mxu1 %v3817_v29 }
 0x182   : > { %1814 = vrot.lane.b32.xlu1 %v4113_v0, %s3820_s10  ;;  %1816 = vrot.lane.b32.xlu0 %v4116_v1, %s3820_s10  ;;  %v4294_v12 = vpop.permute.xlu0 %676  ;;  %s5142_s10 = sld [smem:[#allocation30_spill]] }
 0x184   : > { %3052 = vmatpush3.bf16.msra.mxu1 %v4210_v33 }
 0x185   : > { %3053 = vmatprep.subr.bf16.mxu1 %v3817_v29 }
 0x186   : > { %1057 = vperm.xlu1 %3435, %v4113_v0   ;;  %1061 = vperm.xlu0 %3436, %v4116_v1   ;;  %v4303_v18 = vpop.permute.xlu0 %766  ;;  %v4305_v19 = vpop.permute.xlu1 %653 }
 0x188   : > { %3054 = vmatpush3.bf16.msra.mxu1 %v4224_v40 }
 0x189   : > { %v3520_v22 = vpop.eup %3519  ;;  %3055 = vmatprep.subr.bf16.mxu1 %v3817_v29 }
 0x18a   : > { %3437 = vset.pattern.permute.xlu1 %v3821_v23  ;;  %3438 = vset.pattern.permute.xlu0 %v3822_v24  ;;  %v1118_v36 = vmul.f32 %v3520_v22, %v4268_v8  ;;  %v3522_v45 = vpop.eup %3521  ;;  %v3827_v23 = vmov 8  }
 0x18b   : > { %v4312_v34 = vpop.permute.xlu0 %648  ;;  %1079 = vperm.xlu1 %3437, %v4113_v0   ;;  %1099 = vperm.xlu0 %3438, %v4113_v0   ;;  %v4316_v35 = vpop.permute.xlu1 %672  ;;  %v1111_v53 = vmul.f32 %v3522_v45, %v4286_v17  ;;  %v3501_v45 = vld [vmem:[%s4086_s23 + $0x10] sm:$0xff]  }
 0x18c   : > { %v1120_v38 = vsel %vm1119_vm5, %v4268_v8, %v1118_v36  ;;  %3056 = vmatpush3.bf16.msra.mxu1 %v4230_v42 }
 0x18d   : > { %v1123_v49 = vsel %vm1121_vm6, %v1122_v44, %v1120_v38  ;;  %v1113_v58 = vsel %vm1112_vm7, %v4286_v17, %v1111_v53  ;;  %3057 = vmatprep.subr.bf16.mxu1 %v3817_v29  ;;  %v2729_v53 = vld [vmem:[%s5089_s7] ss:$0 sm:$0xff] }
 0x18f   : > { %v1263_v37 = vpop.permute.xlu0 %1262  ;;  %1083 = vperm.xlu1 %3437, %v4116_v1   ;;  %1666 = vrot.lane.b32.xlu0 %v4310_v25, %s3811_s17 }
 0x190   : > { %3441 = vset.pattern.permute.xlu0 %v3812_v9  ;;  %v4327_v43 = vpop.permute.xlu1 %689  ;;  %v1268_v46 = vadd.f32 %v1263_v37, %v4170_v20  ;;  %v1629_v20 = vsub.f32 %v4125_v4, %v4252_v57  ;;  %v1116_v57 = vsel %vm1114_vm8, %v1115_v62, %v1113_v58  ;;  %3058 = vmatpush3.bf16.msra.mxu1 %v4238_v48 }
 0x191   : > { %3059 = vmatprep.subr.bf16.mxu1 %v3817_v29 }
 0x192   : > { %v4356_v63 = vmul.f32 %v1629_v20, %v1629_v20 }
 0x193   : > { %v1283_v50 = vpop.permute.xlu0 %1282  ;;  %3439 = vset.pattern.permute.xlu1 %v3822_v24  ;;  %1131 = vperm.xlu0 %3441, %v1123_v49  }
 0x194   : > { %v1288_v51 = vadd.f32 %v1283_v50, %v1268_v46  ;;  %1103 = vperm.xlu1 %3439, %v4116_v1   ;;  %v4335_v52 = vpop.permute.xlu1 %693  ;;  %3060 = vmatpush3.bf16.msra.mxu1 %v4256_v61  ;;  %v2728_v46 = vld [vmem:[%s5087_s5] ss:$0 sm:$0xff] }
 0x195   : > { %3061 = vmatprep.subr.bf16.mxu1 %v3817_v29  ;;  %v660_v49 = vmul.f32 %v2728_v46, %v4312_v34  ;;  %v661_v50 = vmul.f32 %v2728_v46, %v4305_v19  ;;  %v2731_v19 = vld [vmem:[%s5087_s5 + $0x2] ss:$0 sm:$0xff] }
 0x196   : > { %3523 = vrsqrt.f32 %v1288_v51  ;;  %vm1304_vm9 = vcmp.eq.f32.partialorder %v1288_v51, inf  ;;  %v1307_v15 = vand.u32 2147483648, %v1288_v51  ;;  %vm1306_vm10 = vcmp.eq.f32.partialorder %v1288_v51, 0.0 }
 0x197   : > { %2006 = vrot.lane.b32.xlu0 %v4113_v0, %s3823_s11  ;;  %v669_v58 = vadd.f32 %v2729_v53, %v661_v50  ;;  %v701_v6 = vmul.f32 %v2731_v19, %v4335_v52 }
 0x198   : > { %1646 = vrot.lane.b32.xlu1 %v4310_v25, %s3809_s20  ;;  %3442 = vset.pattern.permute.xlu0 %v3824_v54 }
 0x199   : > { %v4348_v59 = vpop.permute.xlu1 %744  ;;  %3440 = vset.pattern.permute.xlu1 %v3812_v9  ;;  %3062 = vmatpush3.bf16.msra.mxu1 %v4272_v11 }
 0x19a   : > { %3087 = vmatprep.subr.bf16.mxu1 %v3817_v29 }
 0x19b   : > { %1249 = vperm.xlu0 %3442, %v4113_v0  }
 0x19c   : > { %1126 = vperm.xlu1 %3440, %v1116_v57   ;;  %3064 = vmatmul.mubr.bf16.vlgmr.msra.gmra.mxu1 %v3501_v45 }
 0x19d   : > { %3088 = vmatpush3.bf16.msra.mxu1 %v4194_v28  ;;  %3103 = vmatprep.mubr.msk.bf16.mxu1 %vm3819_vm4, %v3817_v29 }
 0x19e   : > { %v4359_v3 = vpop.permute.xlu1 %762  ;;  %3089 = vmatprep.subr.bf16.mxu1 %v3817_v29 }
 0x19f   : > { %3445 = vset.pattern.permute.xlu0 %v3825_v5 }
 0x1a0   : > { %1648 = vrot.lane.b32.xlu1 %v4356_v63, %s3809_s20  ;;  %1275 = vperm.xlu0 %3445, %v4116_v1  }
 0x1a1   : > { %3443 = vset.pattern.permute.xlu1 %v3824_v54  ;;  %3090 = vmatpush3.bf16.msra.mxu1 %v4202_v31  ;;  %v668_v54 = vadd.f32 %v2729_v53, %v660_v49 }
 0x1a2   : > { %v1265_v7 = vpop.permute.xlu1 %1264  ;;  %3091 = vmatprep.subr.bf16.mxu1 %v3817_v29 }
 0x1a3   : > { %v3524_v8 = vpop.eup %3523  ;;  %v1269_v14 = vadd.f32 %v1265_v7, %v4183_v26  ;;  %v3826_v26 = vmov 9   ;;  %v740_v7 = vpop.permute.xlu0 %739 }
 0x1a4   : > { %1668 = vrot.lane.b32.xlu1 %v4356_v63, %s3811_s17  ;;  %3447 = vset.pattern.permute.xlu0 %v3812_v9  ;;  %v1303_v13 = vmul.f32 %v3524_v8, %v1288_v51 }
 0x1a5   : > { %3092 = vmatpush3.bf16.msra.mxu1 %v4210_v33 }
 0x1a6   : > { %v1285_v16 = vpop.permute.xlu1 %1284  ;;  %v1305_v17 = vsel %vm1304_vm9, %v1288_v51, %v1303_v13  ;;  %3093 = vmatprep.subr.bf16.mxu1 %v3817_v29  ;;  %v2730_v51 = vld [vmem:[%s5087_s5 + $0x1] ss:$0 sm:$0xff] }
 0x1a7   : > { %v1289_v21 = vadd.f32 %v1285_v16, %v1269_v14  ;;  %v1308_v22 = vsel %vm1306_vm10, %v1307_v15, %v1305_v17  ;;  %v684_v20 = vmul.f32 %v2730_v51, %v4294_v12  ;;  %v683_v34 = vmul.f32 %v2730_v51, %v4316_v35  ;;  %v4437_v12 = vld [vmem:[%s5088_s6] ss:$0 sm:$0xff] }
 0x1a8   : > { %2008 = vrot.lane.b32.xlu1 %v4116_v1, %s3823_s11  ;;  %1318 = vperm.xlu0 %3447, %v1308_v22   ;;  %v748_v14 = vmul.f32 %v4437_v12, %v4348_v59  ;;  %v747_v15 = vmul.f32 %v4437_v12, %v740_v7  ;;  %v4460_v59 = vld [vmem:[%s5088_s6 + $0x2] ss:$0 sm:$0xff]  ;;  %s615_s11 = scalar_lea.vmem [#allocation11], %s2718_s4  ;;  %s2512_s4 = scalar_lea.sflag [#allocation4], %s4072_s30 }
 0x1a9   : > { %3525 = vrsqrt.f32 %v1289_v21  ;;  %vm1311_vm11 = vcmp.eq.f32.partialorder %v1289_v21, inf  ;;  %v1314_v38 = vand.u32 2147483648, %v1289_v21  ;;  %vm1313_vm12 = vcmp.eq.f32.partialorder %v1289_v21, 0.0  ;;  %3094 = vmatpush3.bf16.msra.mxu1 %v4224_v40  ;;  %s2527_s21 = sshll.u32 %s615_s11, 4  ;;  %s5029_s21 = int_to_ptr.vmem [resolvable:$true] %s2527_s21 }
 0x1aa   : > { %3095 = vmatprep.subr.bf16.mxu1 %v3817_v29  ;;  %v686_v62 = vadd.f32 %v684_v20, %v669_v58  ;;  %v685_v57 = vadd.f32 %v683_v34, %v668_v54  ;;  %v783_v35 = vpop.permute.xlu1 %782 }
 0x1ac   : > { %1253 = vperm.xlu1 %3443, %v4116_v1   ;;  %3450 = vset.pattern.permute.xlu0 %v3826_v26  ;;  %v4441_v13 = vadd.f32 %v701_v6, %v686_v62 }
 0x1ad   : > { %3096 = vmatpush3.bf16.msra.mxu1 %v4230_v42 }
 0x1ae   : > { %3097 = vmatprep.subr.bf16.mxu1 %v3817_v29  ;;  %v787_v52 = vpop.permute.xlu1 %786  ;;  %v750_v17 = vadd.f32 %v748_v14, %v4441_v13 }
 0x1b0   : > { %3444 = vset.pattern.permute.xlu1 %v3825_v5  ;;  %v700_v5 = vmul.f32 %v2731_v19, %v4327_v43  ;;  %v4449_v43 = vld [vmem:[%s5088_s6 + $0x1] ss:$0 sm:$0xff] }
 0x1b1   : > { %1271 = vperm.xlu1 %3444, %v4113_v0   ;;  %3098 = vmatpush3.bf16.msra.mxu1 %v4238_v48  ;;  %v770_v16 = vmul.f32 %v4449_v43, %v4303_v18  ;;  %v790_v18 = vmul.f32 %v4460_v59, %v787_v52 }
 0x1b2   : > { %3099 = vmatprep.subr.bf16.mxu1 %v3817_v29  ;;  %v4439_v8 = vadd.f32 %v700_v5, %v685_v57 }
 0x1b4   : > { %v749_v22 = vadd.f32 %v747_v15, %v4439_v8 }
 0x1b5   : > { %3446 = vset.pattern.permute.xlu1 %v3827_v23  ;;  %3100 = vmatpush3.bf16.msra.mxu1 %v4256_v61 }
 0x1b6   : > { %v3526_v24 = vpop.eup %3525  ;;  %1291 = vperm.xlu1 %3446, %v4113_v0   ;;  %3101 = vmatprep.subr.bf16.mxu1 %v3817_v29 }
 0x1b7   : > { %v1310_v36 = vmul.f32 %v3526_v24, %v1289_v21  ;;  %v789_v24 = vmul.f32 %v4460_v59, %v783_v35 }
 0x1b9   : > { %v1312_v37 = vsel %vm1311_vm11, %v1289_v21, %v1310_v36  ;;  %3102 = vmatpush3.bf16.msra.mxu1 %v4272_v11  ;;  %v769_v21 = vmul.f32 %v4449_v43, %v4359_v3 }
 0x1ba   : > { %1295 = vperm.xlu1 %3446, %v4116_v1   ;;  %v1315_v44 = vsel %vm1313_vm12, %v1314_v38, %v1312_v37  ;;  %3127 = vmatprep.subr.bf16.mxu1 %v3817_v29  ;;  %v772_v37 = vadd.f32 %v770_v16, %v750_v17  ;;  %v4467_v38 = vld [vmem:[%s5140_s24] ss:$0 sm:$0xff] }
 0x1bb   : > { %v771_v36 = vadd.f32 %v769_v21, %v749_v22 }
 0x1bc   : > { %v792_v45 = vadd.f32 %v790_v18, %v772_v37 }
 0x1bd   : > { %v791_v46 = vadd.f32 %v789_v24, %v771_v36 }
 0x1be   : > { %3448 = vset.pattern.permute.xlu1 %v3812_v9 }
 0x1bf   : > { %1323 = vperm.xlu1 %3448, %v1315_v44  }
 0x1c3   : > { %3449 = vset.pattern.permute.xlu1 %v3826_v26 }
 0x1e8   : > { %v1457_v26 = vpop.permute.xlu0 %1456  ;;  %v1455_v23 = vpop.permute.xlu1 %1454 }
 0x1e9   : > { %v1461_v58 = vadd.f32 %v1457_v26, %v4248_v56 }
 0x1f5   : > { %v810_v3 = vpop.permute.xlu0 %809  ;;  %v815_v44 = vpop.permute.xlu1 %814 }
 0x1f6   : > { %v817_v49 = vmul.f32 %v4467_v38, %v810_v3  ;;  %v818_v50 = vmul.f32 %v4467_v38, %v815_v44 }
 0x1f8   : > { %v819_v51 = vadd.f32 %v817_v49, %v791_v46  ;;  %v820_v53 = vadd.f32 %v818_v50, %v792_v45 }
 0x1f9   : > { %v1477_v20 = vpop.permute.xlu0 %1476  ;;  %v1475_v54 = vpop.permute.xlu1 %1474 }
 0x1fa   : > { %v821_v34 = vmax.f32 %v819_v51, 0.0  ;;  %v822_v19 = vmax.f32 %v820_v53, 0.0  ;;  %v4472_v62 = vadd.f32 %v1477_v20, %v1461_v58  ;;  %v3830_v51 = vmov 10  }
 0x1fc   : > { %v823_v57 = vpack.c.bf16 %v822_v19, %v821_v34  ;;  %3527 = vrsqrt.f32 %v4472_v62  ;;  %vm1503_vm13 = vcmp.eq.f32.partialorder %v4472_v62, inf  ;;  %vm1505_vm14 = vcmp.eq.f32.partialorder %v4472_v62, 0.0 }
 0x1fd   : > { %v1817_v5 = vpop.permute.xlu0 %1816  ;;  %v1815_v6 = vpop.permute.xlu1 %1814 }
 0x1fe   : > { %v1821_v35 = vsub.f32 %v4125_v4, %v1817_v5  ;;  %v1820_v7 = vsub.f32 %v4119_v2, %v1815_v6  ;;  %2964 = vmatmul.mubr.bf16.vlgmr.msra.gmra.mxu0 %v823_v57  ;;  %v1460_v4 = vadd.f32 %v1455_v23, %v4246_v55  ;;  %v1506_v6 = vand.u32 2147483648, %v4472_v62 }
 0x1ff   : > { %2988 = vmatpush3.bf16.msra.mxu0 %v4192_v27  ;;  %3003 = vmatprep.mubr.msk.bf16.mxu0 %vm3819_vm4, %v3817_v29 }
 0x200   : > { %v4480_v56 = vmul.f32 %v1821_v35, %v1821_v35  ;;  %v4482_v14 = vmul.f32 %v1820_v7, %v1820_v7  ;;  %2989 = vmatprep.subr.bf16.mxu0 %v3817_v29  ;;  %v4492_v16 = vadd.f32 %v1475_v54, %v1460_v4 }
 0x201   : > { %v1062_v15 = vpop.permute.xlu0 %1061  ;;  %v1058_v52 = vpop.permute.xlu1 %1057 }
 0x202   : > { %1840 = vrot.lane.b32.xlu0 %v4480_v56, %s3809_s20  ;;  %1838 = vrot.lane.b32.xlu1 %v4482_v14, %s3809_s20  ;;  %3529 = vrsqrt.f32 %v4492_v16  ;;  %v1065_v26 = vmul.f32 %v4437_v12, %v1062_v15  ;;  %v1064_v24 = vmul.f32 %v4437_v12, %v1058_v52  ;;  %vm1496_vm15 = vcmp.eq.f32.partialorder %v4492_v16, inf }
 0x203   : > { %2990 = vmatpush3.bf16.msra.mxu0 %v4200_v30  ;;  %vm1498_vm0 = vcmp.eq.f32.partialorder %v4492_v16, 0.0 }
 0x204   : > { %2991 = vmatprep.subr.bf16.mxu0 %v3817_v29  ;;  %v1067_v44 = vadd.f32 %v1065_v26, %v4441_v13  ;;  %v1066_v49 = vadd.f32 %v1064_v24, %v4439_v8  ;;  %v3831_v24 = vmov 12  }
 0x206   : > { %v1100_v17 = vpop.permute.xlu0 %1099  ;;  %2200 = vrot.lane.b32.xlu0 %v4116_v1, %s3828_s12  ;;  %2198 = vrot.lane.b32.xlu1 %v4113_v0, %s3828_s12  ;;  %v1080_v21 = vpop.permute.xlu1 %1079  ;;  %s2793_s12 = sshll.u32 %s3789_s28, 8  ;;  %s3843_s28 = smov [#allocation11]  }
 0x207   : > { %2992 = vmatpush3.bf16.msra.mxu0 %v4208_v32  ;;  %v1086_v18 = vmul.f32 %v4449_v43, %v1080_v21  ;;  %v1106_v53 = vmul.f32 %v4460_v59, %v1100_v17  ;;  %s3709_s15 = sshll.u32 %s3843_s28, 4  ;;  %s3710_s15 = int_to_ptr.vmem [resolvable:$false] %s3709_s15 }
 0x208   : > { %2993 = vmatprep.subr.bf16.mxu0 %v3817_v29  ;;  %p3712_p1 = scmp.lt.s32.totalorder %s5029_s21, %s3710_s15 }
 0x209   : > { %v3528_v23 = vpop.eup %3527  ;;  %v1088_v20 = vadd.f32 %v1086_v18, %v1066_v49  ;;  %v1499_v18 = vand.u32 2147483648, %v4492_v16  ;;  %v4562_v49 = vld [vmem:[%s4110_s8 + $0x8] sm:$0xff] }
 0x20a   : > { %v1667_v55 = vpop.permute.xlu0 %1666  ;;  %1860 = vrot.lane.b32.xlu0 %v4480_v56, %s3811_s17  ;;  %1858 = vrot.lane.b32.xlu1 %v4482_v14, %s3811_s17  ;;  %v1084_v22 = vpop.permute.xlu1 %1083  ;;  %v1502_v46 = vmul.f32 %v3528_v23, %v4472_v62 }
 0x20b   : > { %2994 = vmatpush3.bf16.msra.mxu0 %v4222_v39  ;;  %v1087_v36 = vmul.f32 %v4449_v43, %v1084_v22 }
 0x20c   : > { %2995 = vmatprep.subr.bf16.mxu0 %v3817_v29  ;;  %v1504_v5 = vsel %vm1503_vm13, %v4472_v62, %v1502_v46 }
 0x20d   : > { %v1089_v50 = vadd.f32 %v1087_v36, %v1067_v44  ;;  %v1507_v52 = vsel %vm1505_vm14, %v1506_v6, %v1504_v5  ;;  %v4553_v44 = vld [vmem:[%s4105_s25] sm:$0xff] }
 0x20e   : > { %1445 = vperm.xlu0 %3450, %v4116_v1   ;;  %v1132_v37 = vpop.permute.xlu0 %1131  ;;  %1441 = vperm.xlu1 %3449, %v4113_v0   ;;  %v3829_v1 = vmov 11  }
 0x20f   : > { %v1104_v3 = vpop.permute.xlu1 %1103  ;;  %2996 = vmatpush3.bf16.msra.mxu0 %v4228_v41  ;;  %v3530_v35 = vpop.eup %3529  ;;  %v1135_v7 = vmul.f32 %v4467_v38, %v1132_v37 }
 0x210   : > { %v1107_v45 = vmul.f32 %v4460_v59, %v1104_v3  ;;  %2997 = vmatprep.subr.bf16.mxu0 %v3817_v29  ;;  %v1495_v62 = vmul.f32 %v3530_v35, %v4492_v16 }
 0x212   : > { %3452 = vset.pattern.permute.xlu0 %v3829_v1  ;;  %3451 = vset.pattern.permute.xlu1 %v3830_v51  ;;  %v2007_v54 = vpop.permute.xlu0 %2006  ;;  %v1109_v34 = vadd.f32 %v1107_v45, %v1089_v50  ;;  %v1497_v36 = vsel %vm1496_vm15, %v4492_v16, %v1495_v62  ;;  %v3832_v50 = vmov 13   ;;  %v3502_v51 = vld [vmem:[%s4086_s23 + $0x18] sm:$0xff]  }
 0x213   : > { %1483 = vperm.xlu0 %3452, %v4113_v0   ;;  %1463 = vperm.xlu1 %3451, %v4113_v0   ;;  %v1647_v58 = vpop.permute.xlu1 %1646  ;;  %v2012_v19 = vsub.f32 %v4119_v2, %v2007_v54  ;;  %v4533_v2 = vld [vmem:[%s4105_s25 + $0x8] sm:$0xff]  ;;  %v1500_v45 = vsel %vm1498_vm0, %v1499_v18, %v1497_v36 }
 0x214   : > { %v1652_v57 = vadd.f32 %v1647_v58, %v4310_v25  ;;  %2998 = vmatpush3.bf16.msra.mxu0 %v4236_v47  ;;  %v1108_v25 = vadd.f32 %v1106_v53, %v1088_v20  ;;  %v1137_v4 = vadd.f32 %v1135_v7, %v1109_v34  ;;  %3104 = vmatmul.mubr.bf16.vlgmr.msra.gmra.mxu1 %v3502_v51 }
 0x215   : > { %2999 = vmatprep.subr.bf16.mxu0 %v3817_v29  ;;  %v4536_v17 = vmul.f32 %v2012_v19, %v2012_v19  ;;  %3128 = vmatpush3.bf16.msra.mxu1 %v4194_v28 }
 0x216   : > { %v4528_v0 = vadd.f32 %v1667_v55, %v1652_v57  ;;  %v1139_v26 = vmax.f32 %v1137_v4, 0.0  ;;  %3143 = vmatprep.mubr.msk.bf16.mxu1 %vm3819_vm4, %v3817_v29  ;;  %3129 = vmatprep.subr.bf16.mxu1 %v3817_v29  ;;  %v3833_v57 = vmov 15  }
 0x217   : > { %3455 = vset.pattern.permute.xlu0 %v3812_v9  ;;  %1467 = vperm.xlu1 %3451, %v4533_v2   ;;  %v1127_v15 = vpop.permute.xlu1 %1126 }
 0x218   : > { %3531 = vrsqrt.f32 %v4528_v0  ;;  %v1134_v21 = vmul.f32 %v4467_v38, %v1127_v15  ;;  %1515 = vperm.xlu0 %3455, %v1507_v52   ;;  %3000 = vmatpush3.bf16.msra.mxu0 %v4254_v60  ;;  %vm1688_vm1 = vcmp.eq.f32.partialorder %v4528_v0, inf  ;;  %v1691_v58 = vand.u32 2147483648, %v4528_v0 }
 0x219   : > { %3001 = vmatprep.subr.bf16.mxu0 %v3817_v29  ;;  %vm1690_vm2 = vcmp.eq.f32.partialorder %v4528_v0, 0.0  ;;  %3130 = vmatpush3.bf16.msra.mxu1 %v4202_v31 }
 0x21a   : > { %v1136_v55 = vadd.f32 %v1134_v21, %v1108_v25  ;;  %3131 = vmatprep.subr.bf16.mxu1 %v3817_v29 }
 0x21b   : > { %3453 = vset.pattern.permute.xlu1 %v3829_v1  ;;  %v1649_v22 = vpop.permute.xlu1 %1648 }
 0x21c   : > { %v1138_v23 = vmax.f32 %v1136_v55, 0.0  ;;  %2050 = vrot.lane.b32.xlu0 %v4536_v17, %s3811_s17  ;;  %1487 = vperm.xlu1 %3453, %v4533_v2  }
 0x21d   : > { %3002 = vmatpush3.bf16.msra.mxu0 %v4270_v10  ;;  %3456 = vset.pattern.permute.xlu0 %v3831_v24 }
 0x21e   : > { %v1140_v37 = vpack.c.bf16 %v1139_v26, %v1138_v23  ;;  %3027 = vmatprep.subr.bf16.mxu0 %v3817_v29  ;;  %3132 = vmatpush3.bf16.msra.mxu1 %v4210_v33  ;;  %v3834_v23 = vmov 14  }
 0x21f   : > { %v1669_v3 = vpop.permute.xlu1 %1668  ;;  %3133 = vmatprep.subr.bf16.mxu1 %v3817_v29 }
 0x220   : > { %1633 = vperm.xlu0 %3456, %v4553_v44   ;;  %3454 = vset.pattern.permute.xlu1 %v3812_v9 }
 0x221   : > { %3004 = vmatmul.mubr.bf16.vlgmr.msra.gmra.mxu0 %v1140_v37  ;;  %1510 = vperm.xlu1 %3454, %v1500_v45  }
 0x222   : > { %3028 = vmatpush3.bf16.msra.mxu0 %v4192_v27  ;;  %3043 = vmatprep.mubr.msk.bf16.mxu0 %vm3819_vm4, %v3817_v29  ;;  %v1653_v27 = vadd.f32 %v1649_v22, %v4356_v63  ;;  %v1250_v63 = vpop.permute.xlu0 %1249 }
 0x223   : > { %v2009_v46 = vpop.permute.xlu1 %2008  ;;  %3029 = vmatprep.subr.bf16.mxu0 %v3817_v29  ;;  %3134 = vmatpush3.bf16.msra.mxu1 %v4224_v40 }
 0x224   : > { %v2013_v16 = vsub.f32 %v4562_v49, %v2009_v46  ;;  %3459 = vset.pattern.permute.xlu0 %v3832_v50  ;;  %v4577_v34 = vadd.f32 %v1669_v3, %v1653_v27  ;;  %3135 = vmatprep.subr.bf16.mxu1 %v3817_v29  ;;  %v4633_v27 = vpop.f32.mrf.mxu1 }
 0x225   : > { %v3532_v1 = vpop.eup %3531  ;;  %1659 = vperm.xlu0 %3459, %v4533_v2   ;;  %2030 = vrot.lane.b32.xlu1 %v4536_v17, %s3809_s20 }
 0x226   : > { %v4570_v53 = vmul.f32 %v2013_v16, %v2013_v16  ;;  %3030 = vmatpush3.bf16.msra.mxu0 %v4200_v30  ;;  %v1687_v20 = vmul.f32 %v3532_v1, %v4528_v0  ;;  %3457 = vset.pattern.permute.xlu1 %v3831_v24  ;;  %3533 = vrsqrt.f32 %v4577_v34  ;;  %v1276_v5 = vpop.permute.xlu0 %1275  ;;  %vm1695_vm3 = vcmp.eq.f32.partialorder %v4577_v34, inf }
 0x227   : > { %v1254_v54 = vpop.permute.xlu1 %1253  ;;  %3031 = vmatprep.subr.bf16.mxu0 %v3817_v29  ;;  %v1279_v33 = vmul.f32 %v4449_v43, %v1276_v5  ;;  %3136 = vmatpush3.bf16.msra.mxu1 %v4230_v42  ;;  %v1698_v51 = vand.u32 2147483648, %v4577_v34  ;;  %vm1697_vm5 = vcmp.eq.f32.partialorder %v4577_v34, 0.0  ;;  %v4670_v5 = vld [vmem:[#allocation7 + $0x28] sm:$0xff]  }
 0x228   : > { %v1689_v19 = vsel %vm1688_vm1, %v4528_v0, %v1687_v20  ;;  %v1257_v6 = vmul.f32 %v4437_v12, %v1254_v54  ;;  %3137 = vmatprep.subr.bf16.mxu1 %v3817_v29  ;;  %v2985_v54 = vpop.f32.mrf.mxu1 }
 0x229   : > { %3461 = vset.pattern.permute.xlu0 %v3812_v9  ;;  %2032 = vrot.lane.b32.xlu1 %v4570_v53, %s3809_s20  ;;  %v1692_v30 = vsel %vm1690_vm2, %v1691_v58, %v1689_v19  ;;  %v4638_v58 = vld [vmem:[#allocation8 + $0x38] sm:$0xff]  }
 0x22a   : > { %1702 = vperm.xlu0 %3461, %v1692_v30   ;;  %3032 = vmatpush3.bf16.msra.mxu0 %v4208_v32  ;;  %v1256_v32 = vmul.f32 %v4437_v12, %v1250_v63  ;;  %v1259_v25 = vadd.f32 %v1257_v6, %v4441_v13  ;;  %v1319_v4 = vpop.permute.xlu0 %1318  ;;  %v4644_v19 = vpop.f32.mrf.mxu1  ;;  %v4649_v30 = vld [vmem:[#allocation8 + $0x30] sm:$0xff]   ;;  %v3503_v63 = vld [vmem:[%s4086_s23 + $0x20] sm:$0xff]  }
 0x22b   : > { %3033 = vmatprep.subr.bf16.mxu0 %v3817_v29  ;;  %v1326_v22 = vmul.f32 %v4467_v38, %v1319_v4  ;;  %3138 = vmatpush3.bf16.msra.mxu1 %v4238_v48 }
 0x22c   : > { %v1272_v28 = vpop.permute.xlu1 %1271  ;;  %v1258_v7 = vadd.f32 %v1256_v32, %v4439_v8  ;;  %v1281_v26 = vadd.f32 %v1279_v33, %v1259_v25  ;;  %3139 = vmatprep.subr.bf16.mxu1 %v3817_v29  ;;  %v4659_v32 = vld [vmem:[#allocation8 + $0x28] sm:$0xff]  }
 0x22d   : > { %2052 = vrot.lane.b32.xlu1 %v4570_v53, %s3811_s17  ;;  %v1278_v31 = vmul.f32 %v4449_v43, %v1272_v28  ;;  %v4654_v28 = vld [vmem:[#allocation7 + $0x38] sm:$0xff]  }
 0x22e   : > { %3034 = vmatpush3.bf16.msra.mxu0 %v4222_v39  ;;  %3464 = vset.pattern.permute.xlu0 %v3833_v57 }
 0x22f   : > { %3035 = vmatprep.subr.bf16.mxu0 %v3817_v29  ;;  %v1280_v15 = vadd.f32 %v1278_v31, %v1258_v7  ;;  %3140 = vmatpush3.bf16.msra.mxu1 %v4256_v61  ;;  %v3556_v31 = vld [vmem:[%s4110_s8] sm:$0xff]  ;;  %s5144_s8 = sld [smem:[#allocation31_spill]] }
 0x230   : > { %3141 = vmatprep.subr.bf16.mxu1 %v3817_v29 }
 0x231   : > { %1637 = vperm.xlu1 %3457, %v4533_v2   ;;  %v1292_v35 = vpop.permute.xlu1 %1291 }
 0x232   : > { %3036 = vmatpush3.bf16.msra.mxu0 %v4228_v41  ;;  %v1298_v0 = vmul.f32 %v4460_v59, %v1292_v35 }
 0x233   : > { %3037 = vmatprep.subr.bf16.mxu0 %v3817_v29  ;;  %v3534_v55 = vpop.eup %3533  ;;  %3142 = vmatpush3.bf16.msra.mxu1 %v4272_v11 }
 0x234   : > { %v1300_v21 = vadd.f32 %v1298_v0, %v1280_v15  ;;  %v1694_v3 = vmul.f32 %v3534_v55, %v4577_v34  ;;  %3167 = vmatprep.subr.bf16.mxu1 %v3817_v29 }
 0x235   : > { %3458 = vset.pattern.permute.xlu1 %v3832_v50  ;;  %v1296_v52 = vpop.permute.xlu1 %1295 }
 0x236   : > { %1655 = vperm.xlu1 %3458, %v4553_v44   ;;  %3038 = vmatpush3.bf16.msra.mxu0 %v4236_v47  ;;  %v1299_v62 = vmul.f32 %v4460_v59, %v1296_v52  ;;  %v1328_v36 = vadd.f32 %v1326_v22, %v1300_v21  ;;  %v1696_v50 = vsel %vm1695_vm3, %v4577_v34, %v1694_v3  ;;  %v2986_v34 = vpop.f32.mrf.mxu1  ;;  %v3836_v21 = vmov 17  }
 0x237   : > { %3039 = vmatprep.subr.bf16.mxu0 %v3817_v29  ;;  %v1699_v20 = vsel %vm1697_vm5, %v1698_v51, %v1696_v50  ;;  %3144 = vmatmul.mubr.bf16.vlgmr.msra.gmra.mxu1 %v3503_v63  ;;  %v3837_v34 = vmov 19  }
 0x238   : > { %v1301_v37 = vadd.f32 %v1299_v62, %v1281_v26  ;;  %v1330_v46 = vmax.f32 %v1328_v36, 0.0  ;;  %3168 = vmatpush3.bf16.msra.mxu1 %v4654_v28  ;;  %3183 = vmatprep.mubr.msk.bf16.mxu1 %vm3819_vm4, %v3817_v29 }
 0x239   : > { %3169 = vmatprep.subr.bf16.mxu1 %v3817_v29 }
 0x23a   : > { %3460 = vset.pattern.permute.xlu1 %v3834_v23  ;;  %v1324_v24 = vpop.permute.xlu1 %1323  ;;  %3040 = vmatpush3.bf16.msra.mxu0 %v4254_v60 }
 0x23b   : > { %v1327_v18 = vmul.f32 %v4467_v38, %v1324_v24  ;;  %1675 = vperm.xlu1 %3460, %v4553_v44   ;;  %3041 = vmatprep.subr.bf16.mxu0 %v3817_v29 }
 0x23d   : > { %v1329_v45 = vadd.f32 %v1327_v18, %v1301_v37 }
 0x23e   : > { %3042 = vmatpush3.bf16.msra.mxu0 %v4270_v10 }
 0x23f   : > { %v1331_v16 = vmax.f32 %v1329_v45, 0.0  ;;  %1679 = vperm.xlu1 %3460, %v4533_v2   ;;  %3067 = vmatprep.subr.bf16.mxu0 %v3817_v29 }
 0x241   : > { %v1332_v1 = vpack.c.bf16 %v1331_v16, %v1330_v46 }
 0x243   : > { %3462 = vset.pattern.permute.xlu1 %v3812_v9  ;;  %3044 = vmatmul.mubr.bf16.vlgmr.msra.gmra.mxu0 %v1332_v1 }
 0x244   : > { %1707 = vperm.xlu1 %3462, %v1699_v20   ;;  %3068 = vmatpush3.bf16.msra.mxu0 %v4638_v58 }
 0x245   : > { %3069 = vmatprep.subr.bf16.mxu0 %v3817_v29  ;;  %3083 = vmatprep.mubr.msk.bf16.mxu0 %vm3819_vm4, %v3817_v29 }
 0x248   : > { %3463 = vset.pattern.permute.xlu1 %v3833_v57  ;;  %3070 = vmatpush3.bf16.msra.mxu0 %v4649_v30  ;;  %v4664_v57 = vld [vmem:[#allocation7 + $0x30] sm:$0xff]  }
 0x249   : > { %3071 = vmatprep.subr.bf16.mxu0 %v3817_v29  ;;  %3170 = vmatpush3.bf16.msra.mxu1 %v4664_v57 }
 0x24a   : > { %3171 = vmatprep.subr.bf16.mxu1 %v3817_v29 }
 0x24c   : > { %3072 = vmatpush3.bf16.msra.mxu0 %v4659_v32 }
 0x24d   : > { %3073 = vmatprep.subr.bf16.mxu0 %v3817_v29  ;;  %3172 = vmatpush3.bf16.msra.mxu1 %v4670_v5 }
 0x24e   : > { %3173 = vmatprep.subr.bf16.mxu1 %v3817_v29 }
 0x250   : > { %3074 = vmatpush3.bf16.msra.mxu0 %v4222_v39  ;;  %v4690_v39 = vpop.f32.mrf.mxu1 }
 0x251   : > { %3075 = vmatprep.subr.bf16.mxu0 %v3817_v29  ;;  %3174 = vmatpush3.bf16.msra.mxu1 %v4224_v40 }
 0x252   : > { %3175 = vmatprep.subr.bf16.mxu1 %v3817_v29  ;;  %v3025_v40 = vpop.f32.mrf.mxu1 }
 0x254   : > { %3076 = vmatpush3.bf16.msra.mxu0 %v4228_v41  ;;  %v4694_v41 = vpop.f32.mrf.mxu1 }
 0x255   : > { %3077 = vmatprep.subr.bf16.mxu0 %v3817_v29  ;;  %3176 = vmatpush3.bf16.msra.mxu1 %v4230_v42 }
 0x256   : > { %3177 = vmatprep.subr.bf16.mxu1 %v3817_v29  ;;  %v3026_v42 = vpop.f32.mrf.mxu1 }
 0x258   : > { %3078 = vmatpush3.bf16.msra.mxu0 %v4236_v47 }
 0x259   : > { %3079 = vmatprep.subr.bf16.mxu0 %v3817_v29  ;;  %3178 = vmatpush3.bf16.msra.mxu1 %v4238_v48 }
 0x25a   : > { %3179 = vmatprep.subr.bf16.mxu1 %v3817_v29 }
 0x25c   : > { %3080 = vmatpush3.bf16.msra.mxu0 %v4254_v60 }
 0x25d   : > { %3081 = vmatprep.subr.bf16.mxu0 %v3817_v29  ;;  %3180 = vmatpush3.bf16.msra.mxu1 %v4256_v61 }
 0x25e   : > { %3181 = vmatprep.subr.bf16.mxu1 %v3817_v29 }
 0x260   : > { %3082 = vmatpush3.bf16.msra.mxu0 %v4270_v10 }
 0x261   : > { %3107 = vmatprep.subr.bf16.mxu0 %v3817_v29  ;;  %3182 = vmatpush3.bf16.msra.mxu1 %v4272_v11 }
 0x262   : > { %3207 = vmatprep.subr.bf16.mxu1 %v3817_v29 }
 0x274   : > { %v1841_v47 = vpop.permute.xlu0 %1840  ;;  %v1839_v48 = vpop.permute.xlu1 %1838 }
 0x275   : > { %v1845_v35 = vadd.f32 %v1841_v47, %v4480_v56  ;;  %v1844_v7 = vadd.f32 %v1839_v48, %v4482_v14  ;;  %v4714_v56 = vpop.f32.mrf.mxu1 }
 0x277   : > { %v3065_v14 = vpop.f32.mrf.mxu1 }
 0x278   : > { %v2201_v60 = vpop.permute.xlu0 %2200  ;;  %v2199_v10 = vpop.permute.xlu1 %2198 }
 0x279   : > { %v2205_v6 = vsub.f32 %v4562_v49, %v2201_v60  ;;  %v2204_v61 = vsub.f32 %v3556_v31, %v2199_v10  ;;  %v3835_v49 = vmov 16   ;;  %v4718_v62 = vpop.f32.mrf.mxu1 }
 0x27b   : > { %v4700_v0 = vmul.f32 %v2205_v6, %v2205_v6  ;;  %v4702_v11 = vmul.f32 %v2204_v61, %v2204_v61  ;;  %v3066_v22 = vpop.f32.mrf.mxu1 }
 0x27c   : > { %v1861_v33 = vpop.permute.xlu0 %1860  ;;  %v1859_v25 = vpop.permute.xlu1 %1858 }
 0x27d   : > { %v1865_v15 = vadd.f32 %v1861_v33, %v1845_v35  ;;  %v1864_v52 = vadd.f32 %v1859_v25, %v1844_v7  ;;  %2224 = vrot.lane.b32.xlu0 %v4700_v0, %s3809_s20  ;;  %2222 = vrot.lane.b32.xlu1 %v4702_v11, %s3809_s20  ;;  %v3838_v7 = vmov 20   ;;  %v3839_v25 = vmov 18   ;;  %s5141_s20 = sld [smem:[#allocation28_spill]] }
 0x27f   : > { %3535 = vrsqrt.f32 %v1865_v15  ;;  %vm1887_vm6 = vcmp.eq.f32.partialorder %v1865_v15, inf  ;;  %v1890_v37 = vand.u32 2147483648, %v1865_v15  ;;  %vm1889_vm7 = vcmp.eq.f32.partialorder %v1865_v15, 0.0 }
 0x280   : > { %3537 = vrsqrt.f32 %v1864_v52  ;;  %vm1880_vm8 = vcmp.eq.f32.partialorder %v1864_v52, inf  ;;  %v1883_v63 = vand.u32 2147483648, %v1864_v52  ;;  %vm1882_vm9 = vcmp.eq.f32.partialorder %v1864_v52, 0.0 }
 0x281   : > { %2244 = vrot.lane.b32.xlu0 %v4700_v0, %s3811_s17  ;;  %2242 = vrot.lane.b32.xlu1 %v4702_v11, %s3811_s17  ;;  %s3705_s17 = scalar_lea.vmem %s5029_s21, 256 }
 0x282   : > { %p3706_p4 = scmp.ne.s32.totalorder %s5029_s21, %s3705_s17 }
 0x284   : > { %p3707_p10 = pnand %p3706_p4, %p4021_p13 }
 0x285   : > { %1829 = vperm.xlu0 %3464, %v4533_v2   ;;  %1825 = vperm.xlu1 %3463, %v4553_v44  }
 0x286   : > { %p3708_p7 = pneg %p3707_p10 }
 0x289   : > { %3465 = vset.pattern.permute.xlu1 %v3835_v49  ;;  %v1442_v4 = vpop.permute.xlu1 %1441  ;;  %3466 = vset.pattern.permute.xlu0 %v3836_v21  ;;  %v1446_v24 = vpop.permute.xlu0 %1445 }
 0x28a   : > { %1847 = vperm.xlu1 %3465, %v4553_v44   ;;  %1867 = vperm.xlu0 %3466, %v4553_v44   ;;  %v1449_v46 = vmul.f32 %v4437_v12, %v1446_v24  ;;  %v1448_v1 = vmul.f32 %v4437_v12, %v1442_v4 }
 0x28c   : > { %v3536_v55 = vpop.eup %3535  ;;  %v1451_v40 = vadd.f32 %v1449_v46, %v4441_v13  ;;  %v1450_v42 = vadd.f32 %v1448_v1, %v4439_v8  ;;  %v4772_v1 = vld [vmem:[#allocation7 + $0x18] sm:$0xff]  }
 0x28d   : > { %v3538_v26 = vpop.eup %3537  ;;  %v1886_v23 = vmul.f32 %v3536_v55, %v1865_v15  ;;  %v3840_v55 = vmov 21  }
 0x28e   : > { %1851 = vperm.xlu1 %3465, %v4533_v2   ;;  %v1464_v36 = vpop.permute.xlu1 %1463  ;;  %3469 = vset.pattern.permute.xlu0 %v3812_v9  ;;  %v1879_v45 = vmul.f32 %v3538_v26, %v1864_v52  ;;  %v1484_v16 = vpop.permute.xlu0 %1483 }
 0x28f   : > { %v1888_v18 = vsel %vm1887_vm6, %v1865_v15, %v1886_v23  ;;  %v1470_v54 = vmul.f32 %v4449_v43, %v1464_v36  ;;  %v1490_v61 = vmul.f32 %v4460_v59, %v1484_v16 }
 0x290   : > { %v1891_v3 = vsel %vm1889_vm7, %v1890_v37, %v1888_v18  ;;  %v1881_v20 = vsel %vm1880_vm8, %v1864_v52, %v1879_v45  ;;  %v3504_v52 = vld [vmem:[%s4086_s23 + $0x28] sm:$0xff]   ;;  %v3841_v45 = vmov 22  }
 0x291   : > { %1899 = vperm.xlu0 %3469, %v1891_v3   ;;  %v1884_v48 = vsel %vm1882_vm9, %v1883_v63, %v1881_v20  ;;  %v1472_v31 = vadd.f32 %v1470_v54, %v1450_v42  ;;  %3184 = vmatmul.mubr.bf16.vlgmr.msra.gmra.mxu1 %v3504_v52 }
 0x292   : > { %3467 = vset.pattern.permute.xlu1 %v3836_v21  ;;  %v1468_v50 = vpop.permute.xlu1 %1467  ;;  %3208 = vmatpush3.bf16.msra.mxu1 %v4654_v28 }
 0x293   : > { %1871 = vperm.xlu1 %3467, %v4533_v2   ;;  %v1471_v51 = vmul.f32 %v4449_v43, %v1468_v50  ;;  %v1516_v10 = vpop.permute.xlu0 %1515  ;;  %v1492_v14 = vadd.f32 %v1490_v61, %v1472_v31  ;;  %3209 = vmatprep.subr.bf16.mxu1 %v3817_v29  ;;  %v4765_v50 = vld [vmem:[#allocation7 + $0x20] sm:$0xff]  }
 0x294   : > { %v1519_v33 = vmul.f32 %v4467_v38, %v1516_v10  ;;  %3223 = vmatprep.mubr.msk.bf16.mxu1 %vm3819_vm4, %v3817_v29 }
 0x295   : > { %3471 = vset.pattern.permute.xlu0 %v3837_v34  ;;  %v1473_v60 = vadd.f32 %v1471_v51, %v1451_v40 }
 0x296   : > { %2039 = vperm.xlu0 %3471, %v4553_v44   ;;  %3210 = vmatpush3.bf16.msra.mxu1 %v4664_v57 }
 0x297   : > { %3468 = vset.pattern.permute.xlu1 %v3812_v9  ;;  %v1488_v47 = vpop.permute.xlu1 %1487  ;;  %v2051_v36 = vpop.permute.xlu0 %2050  ;;  %3211 = vmatprep.subr.bf16.mxu1 %v3817_v29 }
 0x298   : > { %v1491_v6 = vmul.f32 %v4460_v59, %v1488_v47  ;;  %1894 = vperm.xlu1 %3468, %v1884_v48   ;;  %v4781_v47 = vld [vmem:[#allocation7 + $0x10] sm:$0xff]  }
 0x29a   : > { %v1493_v35 = vadd.f32 %v1491_v6, %v1473_v60  ;;  %3474 = vset.pattern.permute.xlu0 %v3838_v7  ;;  %3212 = vmatpush3.bf16.msra.mxu1 %v4670_v5 }
 0x29b   : > { %2063 = vperm.xlu0 %3474, %v4533_v2   ;;  %3213 = vmatprep.subr.bf16.mxu1 %v3817_v29  ;;  %v1634_v51 = vpop.permute.xlu0 %1633 }
 0x29c   : > { %3470 = vset.pattern.permute.xlu1 %v3839_v25  ;;  %v1511_v15 = vpop.permute.xlu1 %1510  ;;  %v1521_v49 = vadd.f32 %v1519_v33, %v1493_v35  ;;  %v1640_v40 = vmul.f32 %v4437_v12, %v1634_v51  ;;  %v4787_v35 = vld [vmem:[#allocation8 + $0x18] sm:$0xff]  }
 0x29d   : > { %v1518_v4 = vmul.f32 %v4467_v38, %v1511_v15  ;;  %2017 = vperm.xlu1 %3470, %v4553_v44   ;;  %v4793_v15 = vld [vmem:[#allocation7 + $0x8] sm:$0xff]  }
 0x29e   : > { %v1523_v26 = vmax.f32 %v1521_v49, 0.0  ;;  %3214 = vmatpush3.bf16.msra.mxu1 %v4765_v50  ;;  %v1642_v33 = vadd.f32 %v1640_v40, %v4439_v8 }
 0x29f   : > { %v1520_v21 = vadd.f32 %v1518_v4, %v1492_v14  ;;  %3476 = vset.pattern.permute.xlu0 %v3840_v55  ;;  %3215 = vmatprep.subr.bf16.mxu1 %v3817_v29 }
 0x2a0   : > { %2209 = vperm.xlu0 %3476, %v4553_v44   ;;  %v2031_v22 = vpop.permute.xlu1 %2030  ;;  %v1660_v48 = vpop.permute.xlu0 %1659 }
 0x2a1   : > { %v1522_v23 = vmax.f32 %v1520_v21, 0.0  ;;  %v2036_v24 = vadd.f32 %v2031_v22, %v4536_v17  ;;  %2021 = vperm.xlu1 %3470, %v4533_v2   ;;  %v4800_v21 = vld [vmem:[#allocation8 + $0x10] sm:$0xff]  }
 0x2a2   : > { %3216 = vmatpush3.bf16.msra.mxu1 %v4772_v1 }
 0x2a3   : > { %v1524_v37 = vpack.c.bf16 %v1523_v26, %v1522_v23  ;;  %v2056_v18 = vadd.f32 %v2051_v36, %v2036_v24  ;;  %3217 = vmatprep.subr.bf16.mxu1 %v3817_v29 }
 0x2a4   : > { %v2033_v3 = vpop.permute.xlu1 %2032  ;;  %3479 = vset.pattern.permute.xlu0 %v3841_v45 }
 0x2a5   : > { %3539 = vrsqrt.f32 %v2056_v18  ;;  %3472 = vset.pattern.permute.xlu1 %v3837_v34  ;;  %3084 = vmatmul.mubr.bf16.vlgmr.msra.gmra.mxu0 %v1524_v37  ;;  %v2037_v17 = vadd.f32 %v2033_v3, %v4570_v53  ;;  %v4776_v34 = vld [vmem:[#allocation8 + $0x20] sm:$0xff]   ;;  %vm2072_vm10 = vcmp.eq.f32.partialorder %v2056_v18, inf  ;;  %v2075_v42 = vand.u32 2147483648, %v2056_v18  ;;  %v1703_v26 = vpop.permute.xlu0 %1702 }
 0x2a6   : > { %2043 = vperm.xlu1 %3472, %v4533_v2   ;;  %3108 = vmatpush3.bf16.msra.mxu0 %v4638_v58  ;;  %vm2074_vm11 = vcmp.eq.f32.partialorder %v2056_v18, 0.0  ;;  %v4809_v37 = vld [vmem:[#allocation7] sm:$0xff]  }
 0x2a7   : > { %3109 = vmatprep.subr.bf16.mxu0 %v3817_v29  ;;  %2235 = vperm.xlu0 %3479, %v4533_v2  }
 0x2a8   : > { %v2053_v46 = vpop.permute.xlu1 %2052  ;;  %3123 = vmatprep.mubr.msk.bf16.mxu0 %vm3819_vm4, %v3817_v29  ;;  %3218 = vmatpush3.bf16.msra.mxu1 %v4781_v47 }
 0x2a9   : > { %v4757_v16 = vadd.f32 %v2053_v46, %v2037_v17  ;;  %3219 = vmatprep.subr.bf16.mxu1 %v3817_v29  ;;  %v4814_v46 = vld [vmem:[#allocation8 + $0x8] sm:$0xff]  }
 0x2aa   : > { %3473 = vset.pattern.permute.xlu1 %v3838_v7  ;;  %3110 = vmatpush3.bf16.msra.mxu0 %v4649_v30 }
 0x2ab   : > { %3541 = vrsqrt.f32 %v4757_v16  ;;  %2059 = vperm.xlu1 %3473, %v4553_v44   ;;  %3111 = vmatprep.subr.bf16.mxu0 %v3817_v29  ;;  %vm2079_vm12 = vcmp.eq.f32.partialorder %v4757_v16, inf  ;;  %v2082_v22 = vand.u32 2147483648, %v4757_v16  ;;  %vm2081_vm13 = vcmp.eq.f32.partialorder %v4757_v16, 0.0 }
 0x2ac   : > { %v1638_v53 = vpop.permute.xlu1 %1637  ;;  %3481 = vset.pattern.permute.xlu0 %v3812_v9  ;;  %3220 = vmatpush3.bf16.msra.mxu1 %v4793_v15 }
 0x2ad   : > { %v1641_v10 = vmul.f32 %v4437_v12, %v1638_v53  ;;  %v1663_v12 = vmul.f32 %v4449_v43, %v1660_v48  ;;  %3221 = vmatprep.subr.bf16.mxu1 %v3817_v29 }
 0x2ae   : > { %3112 = vmatpush3.bf16.msra.mxu0 %v4659_v32 }
 0x2af   : > { %3113 = vmatprep.subr.bf16.mxu0 %v3817_v29  ;;  %3475 = vset.pattern.permute.xlu1 %v3812_v9  ;;  %v1643_v14 = vadd.f32 %v1641_v10, %v4441_v13 }
 0x2b0   : > { %3222 = vmatpush3.bf16.msra.mxu1 %v4809_v37 }
 0x2b1   : > { %v1656_v20 = vpop.permute.xlu1 %1655  ;;  %3247 = vmatprep.subr.bf16.mxu1 %v3817_v29  ;;  %v1665_v3 = vadd.f32 %v1663_v12, %v1643_v14 }
 0x2b2   : > { %v3540_v54 = vpop.eup %3539  ;;  %3114 = vmatpush3.bf16.msra.mxu0 %v4776_v34  ;;  %v1662_v6 = vmul.f32 %v4449_v43, %v1656_v20 }
 0x2b3   : > { %v2071_v63 = vmul.f32 %v3540_v54, %v2056_v18  ;;  %3115 = vmatprep.subr.bf16.mxu0 %v3817_v29  ;;  %v3505_v54 = vld [vmem:[%s4086_s23 + $0x30] sm:$0xff]  }
 0x2b4   : > { %v1664_v49 = vadd.f32 %v1662_v6, %v1642_v33  ;;  %3224 = vmatmul.mubr.bf16.vlgmr.msra.gmra.mxu1 %v3505_v54 }
 0x2b5   : > { %v2073_v60 = vsel %vm2072_vm10, %v2056_v18, %v2071_v63  ;;  %v1710_v18 = vmul.f32 %v4467_v38, %v1703_v26  ;;  %3248 = vmatpush3.bf16.msra.mxu1 %v4654_v28  ;;  %3263 = vmatprep.mubr.msk.bf16.mxu1 %vm3819_vm4, %v3817_v29  ;;  %v3842_v28 = vmov 23  }
 0x2b6   : > { %v1676_v31 = vpop.permute.xlu1 %1675  ;;  %v2076_v61 = vsel %vm2074_vm11, %v2075_v42, %v2073_v60  ;;  %3116 = vmatpush3.bf16.msra.mxu0 %v4787_v35  ;;  %v4822_v42 = vld [vmem:[#allocation8] sm:$0xff]   ;;  %3249 = vmatprep.subr.bf16.mxu1 %v3817_v29 }
 0x2b7   : > { %2086 = vperm.xlu1 %3475, %v2076_v61   ;;  %3117 = vmatprep.subr.bf16.mxu0 %v3817_v29  ;;  %v1682_v25 = vmul.f32 %v4460_v59, %v1676_v31 }
 0x2b8   : > { %v3542_v7 = vpop.eup %3541 }
 0x2b9   : > { %v2078_v52 = vmul.f32 %v3542_v7, %v4757_v16  ;;  %v1684_v43 = vadd.f32 %v1682_v25, %v1664_v49  ;;  %3250 = vmatpush3.bf16.msra.mxu1 %v4664_v57 }
 0x2ba   : > { %v1680_v4 = vpop.permute.xlu1 %1679  ;;  %3118 = vmatpush3.bf16.msra.mxu0 %v4800_v21  ;;  %3251 = vmatprep.subr.bf16.mxu1 %v3817_v29 }
 0x2bb   : > { %v2080_v23 = vsel %vm2079_vm12, %v4757_v16, %v2078_v52  ;;  %3119 = vmatprep.subr.bf16.mxu0 %v3817_v29  ;;  %v1683_v24 = vmul.f32 %v4460_v59, %v1680_v4  ;;  %v1712_v59 = vadd.f32 %v1710_v18, %v1684_v43 }
 0x2bc   : > { %v2083_v36 = vsel %vm2081_vm13, %v2082_v22, %v2080_v23 }
 0x2bd   : > { %2091 = vperm.xlu1 %3475, %v2083_v36   ;;  %v1685_v53 = vadd.f32 %v1683_v24, %v1665_v3  ;;  %v1714_v48 = vmax.f32 %v1712_v59, 0.0  ;;  %3252 = vmatpush3.bf16.msra.mxu1 %v4670_v5 }
 0x2be   : > { %v940_v17 = vpop.f32.mrf.mxu0  ;;  %3120 = vmatpush3.bf16.msra.mxu0 %v4814_v46  ;;  %3253 = vmatprep.subr.bf16.mxu1 %v3817_v29 }
 0x2bf   : > { %v1708_v16 = vpop.permute.xlu1 %1707  ;;  %3121 = vmatprep.subr.bf16.mxu0 %v3817_v29 }
 0x2c0   : > { %v1711_v51 = vmul.f32 %v4467_v38, %v1708_v16  ;;  %v2965_v20 = vpop.f32.mrf.mxu0 }
 0x2c1   : > { %3477 = vset.pattern.permute.xlu1 %v3840_v55  ;;  %3254 = vmatpush3.bf16.msra.mxu1 %v4765_v50 }
 0x2c2   : > { %v1713_v63 = vadd.f32 %v1711_v51, %v1685_v53  ;;  %v943_v40 = vpop.f32.mrf.mxu0  ;;  %2213 = vperm.xlu1 %3477, %v4533_v2   ;;  %3122 = vmatpush3.bf16.msra.mxu0 %v4822_v42 }
 0x2c3   : > { %3147 = vmatprep.subr.bf16.mxu0 %v3817_v29  ;;  %3255 = vmatprep.subr.bf16.mxu1 %v3817_v29  ;;  %v1039_v5 = vadd.f32 %v4644_v19, %v943_v40  ;;  %v3506_v40 = vld [vmem:[%s4086_s23 + $0x38] sm:$0xff]   ;;  %s3711_s23 = scalar_lea.vmem %s3710_s15, 512 }
 0x2c4   : > { %v1715_v60 = vmax.f32 %v1713_v63, 0.0  ;;  %v2966_v10 = vpop.f32.mrf.mxu0  ;;  %p3713_p12 = scmp.lt.s32.totalorder %s3711_s23, %s3705_s17 }
 0x2c5   : > { %3256 = vmatpush3.bf16.msra.mxu1 %v4772_v1 }
 0x2c6   : > { %v1716_v38 = vpack.c.bf16 %v1715_v60, %v1714_v48  ;;  %3478 = vset.pattern.permute.xlu1 %v3841_v45  ;;  %3257 = vmatprep.subr.bf16.mxu1 %v3817_v29  ;;  %p3714_p9 = por %p3713_p12, %p3712_p1 }
 0x2c7   : > { %2231 = vperm.xlu1 %3478, %v4553_v44  }
 0x2c8   : > { %3124 = vmatmul.mubr.bf16.vlgmr.msra.gmra.mxu0 %v1716_v38  ;;  %p3715_p0 = pnand %p3714_p9, %p3708_p7 }
 0x2c9   : > { %3148 = vmatpush3.bf16.msra.mxu0 %v4638_v58  ;;  %3163 = vmatprep.mubr.msk.bf16.mxu0 %vm3819_vm4, %v3817_v29 }
 0x2ca   : > { %3149 = vmatprep.subr.bf16.mxu0 %v3817_v29  ;;  %3258 = vmatpush3.bf16.msra.mxu1 %v4781_v47 }
 0x2cb   : > { %3480 = vset.pattern.permute.xlu1 %v3842_v28  ;;  %3259 = vmatprep.subr.bf16.mxu1 %v3817_v29 }
 0x2cc   : > { %2251 = vperm.xlu1 %3480, %v4553_v44  }
 0x2cd   : > { %3150 = vmatpush3.bf16.msra.mxu0 %v4649_v30 }
 0x2ce   : > { %3151 = vmatprep.subr.bf16.mxu0 %v3817_v29  ;;  %3260 = vmatpush3.bf16.msra.mxu1 %v4793_v15 }
 0x2cf   : > { %3261 = vmatprep.subr.bf16.mxu1 %v3817_v29 }
 0x2d0   : > { %2255 = vperm.xlu1 %3480, %v4533_v2   ;;  %v4865_v2 = vld [vmem:[%s5141_s20] ss:$0 sm:$0xff]  ;;  %s5034_s20 = scalar_lea.hbm %s5144_s8, %s2793_s12 }
 0x2d1   : > { %3152 = vmatpush3.bf16.msra.mxu0 %v4659_v32  ;;  %v1043_v47 = vadd.f32 %v4865_v2, %v1039_v5 }
 0x2d2   : > { %3153 = vmatprep.subr.bf16.mxu0 %v3817_v29  ;;  %3262 = vmatpush3.bf16.msra.mxu1 %v4809_v37 }
 0x2d3   : > { %v1045_v25 = vmax.f32 %v1043_v47, 0.0 }
 0x2d4   : > { %3482 = vset.pattern.permute.xlu1 %v3812_v9  ;;  %v1036_v9 = vadd.f32 %v4633_v27, %v940_v17  ;;  %v4878_v19 = vpop.f32.mrf.mxu1 }
 0x2d5   : > { %3154 = vmatpush3.bf16.msra.mxu0 %v4776_v34  ;;  %3264 = vmatmul.mubr.bf16.vlgmr.msra.gmra.mxu1 %v3506_v40 }
 0x2d6   : > { %3155 = vmatprep.subr.bf16.mxu0 %v3817_v29  ;;  %v1042_v57 = vadd.f32 %v4865_v2, %v1036_v9  ;;  %v3105_v33 = vpop.f32.mrf.mxu1 }
 0x2d8   : > { %v1044_v1 = vmax.f32 %v1042_v57, 0.0  ;;  %v4881_v12 = vpop.f32.mrf.mxu1 }
 0x2d9   : > { %3156 = vmatpush3.bf16.msra.mxu0 %v4787_v35 }
 0x2da   : > { %3157 = vmatprep.subr.bf16.mxu0 %v3817_v29  ;;  %v3106_v14 = vpop.f32.mrf.mxu1 }
 0x2dd   : > { %3158 = vmatpush3.bf16.msra.mxu0 %v4800_v21 }
 0x2de   : > { %3159 = vmatprep.subr.bf16.mxu0 %v3817_v29 }
 0x2e1   : > { %v1178_v44 = vpop.f32.mrf.mxu0  ;;  %3160 = vmatpush3.bf16.msra.mxu0 %v4814_v46 }
 0x2e2   : > { %v1226_v55 = vadd.f32 %v4690_v39, %v1178_v44  ;;  %3161 = vmatprep.subr.bf16.mxu0 %v3817_v29  ;;  %v4892_v44 = vld [vmem:[%s5088_s6] ss:$0 sm:$0xff] }
 0x2e3   : > { %v3005_v27 = vpop.f32.mrf.mxu0 }
 0x2e4   : > { %v1232_v45 = vadd.f32 %v4865_v2, %v1226_v55 }
 0x2e5   : > { %v1181_v50 = vpop.f32.mrf.mxu0  ;;  %3162 = vmatpush3.bf16.msra.mxu0 %v4822_v42 }
 0x2e6   : > { %v1234_v6 = vmax.f32 %v1232_v45, 0.0  ;;  %v1229_v31 = vadd.f32 %v4694_v41, %v1181_v50  ;;  %3187 = vmatprep.subr.bf16.mxu0 %v3817_v29 }
 0x2e7   : > { %v3006_v61 = vpop.f32.mrf.mxu0 }
 0x2e8   : > { %v1236_v39 = vmax.f32 %v1044_v1, %v1234_v6  ;;  %v1233_v7 = vadd.f32 %v4865_v2, %v1229_v31  ;;  %v4904_v1 = vld [vmem:[%s5088_s6 + $0x1] ss:$0 sm:$0xff] }
 0x2ea   : > { %v1235_v15 = vmax.f32 %v1233_v7, 0.0 }
 0x2ec   : > { %v1237_v52 = vmax.f32 %v1045_v25, %v1235_v15 }
 0x2ef   : > { %v2225_v49 = vpop.permute.xlu0 %2224  ;;  %v2223_v4 = vpop.permute.xlu1 %2222 }
 0x2f0   : > { %v2229_v22 = vadd.f32 %v2225_v49, %v4700_v0  ;;  %v2228_v41 = vadd.f32 %v2223_v4, %v4702_v11  ;;  %v4917_v4 = vld [vmem:[%s5088_s6 + $0x2] ss:$0 sm:$0xff] }
 0x2f3   : > { %v2245_v26 = vpop.permute.xlu0 %2244  ;;  %v2243_v23 = vpop.permute.xlu1 %2242 }
 0x2f4   : > { %v2249_v43 = vadd.f32 %v2245_v26, %v2229_v22  ;;  %v2248_v24 = vadd.f32 %v2243_v23, %v2228_v41 }
 0x2f6   : > { %3543 = vrsqrt.f32 %v2249_v43  ;;  %vm2271_vm14 = vcmp.eq.f32.partialorder %v2249_v43, inf  ;;  %vm2273_vm15 = vcmp.eq.f32.partialorder %v2249_v43, 0.0  ;;  %v2274_v0 = vand.u32 2147483648, %v2249_v43 }
 0x2f7   : > { %3545 = vrsqrt.f32 %v2248_v24  ;;  %vm2264_vm0 = vcmp.eq.f32.partialorder %v2248_v24, inf  ;;  %v2267_v63 = vand.u32 2147483648, %v2248_v24  ;;  %vm2266_vm1 = vcmp.eq.f32.partialorder %v2248_v24, 0.0 }
 0x300   : > { %v1826_v36 = vpop.permute.xlu1 %1825  ;;  %v1830_v17 = vpop.permute.xlu0 %1829 }
 0x301   : > { %v1833_v57 = vmul.f32 %v4892_v44, %v1830_v17  ;;  %v1832_v27 = vmul.f32 %v4892_v44, %v1826_v36 }
 0x303   : > { %v3544_v37 = vpop.eup %3543  ;;  %v1370_v18 = vpop.f32.mrf.mxu0  ;;  %v1835_v7 = vadd.f32 %v1833_v57, %v4441_v13 }
 0x304   : > { %v3546_v3 = vpop.eup %3545  ;;  %v1418_v16 = vadd.f32 %v4714_v56, %v1370_v18  ;;  %v2270_v59 = vmul.f32 %v3544_v37, %v2249_v43 }
 0x305   : > { %v3045_v53 = vpop.f32.mrf.mxu0  ;;  %v1848_v51 = vpop.permute.xlu1 %1847  ;;  %v2263_v11 = vmul.f32 %v3546_v3, %v2248_v24 }
 0x306   : > { %v1424_v20 = vadd.f32 %v4865_v2, %v1418_v16  ;;  %v2272_v54 = vsel %vm2271_vm14, %v2249_v43, %v2270_v59  ;;  %v1868_v28 = vpop.permute.xlu0 %1867  ;;  %v1854_v6 = vmul.f32 %v4904_v1, %v1848_v51 }
 0x307   : > { %v1373_v48 = vpop.f32.mrf.mxu0  ;;  %v2275_v60 = vsel %vm2273_vm15, %v2274_v0, %v2272_v54  ;;  %v2265_v10 = vsel %vm2264_vm0, %v2248_v24, %v2263_v11  ;;  %v1874_v26 = vmul.f32 %v4917_v4, %v1868_v28 }
 0x308   : > { %v1426_v38 = vmax.f32 %v1424_v20, 0.0  ;;  %v1421_v56 = vadd.f32 %v4718_v62, %v1373_v48  ;;  %2283 = vperm.xlu1 %3482, %v2275_v60   ;;  %v2268_v9 = vsel %vm2266_vm1, %v2267_v63, %v2265_v10  ;;  %v4899_v62 = vpop.f32.mrf.mxu1 }
 0x309   : > { %2278 = vperm.xlu0 %3481, %v2268_v9   ;;  %v3046_v5 = vpop.f32.mrf.mxu0  ;;  %v1852_v55 = vpop.permute.xlu1 %1851 }
 0x30a   : > { %v4896_v45 = vmax.f32 %v1236_v39, %v1426_v38  ;;  %v1425_v50 = vadd.f32 %v4865_v2, %v1421_v56  ;;  %v1855_v47 = vmul.f32 %v4904_v1, %v1852_v55  ;;  %v3145_v61 = vpop.f32.mrf.mxu1  ;;  %v1834_v39 = vadd.f32 %v1832_v27, %v4439_v8 }
 0x30c   : > { %v1427_v31 = vmax.f32 %v1425_v50, 0.0  ;;  %v4912_v15 = vpop.f32.mrf.mxu1  ;;  %v1857_v14 = vadd.f32 %v1855_v47, %v1835_v7  ;;  %v1900_v49 = vpop.permute.xlu0 %1899  ;;  %v1856_v41 = vadd.f32 %v1854_v6, %v1834_v39 }
 0x30e   : > { %v4910_v33 = vmax.f32 %v1237_v52, %v1427_v31  ;;  %v1872_v25 = vpop.permute.xlu1 %1871  ;;  %v3146_v23 = vpop.f32.mrf.mxu1  ;;  %v4924_v52 = vld [vmem:[%s5140_s24] ss:$0 sm:$0xff]  ;;  %v1876_v37 = vadd.f32 %v1874_v26, %v1856_v41 }
 0x30f   : > { %v1875_v22 = vmul.f32 %v4917_v4, %v1872_v25  ;;  %v1903_v24 = vmul.f32 %v4924_v52, %v1900_v49 }
 0x311   : > { %v1877_v43 = vadd.f32 %v1875_v22, %v1857_v14  ;;  %v2040_v54 = vpop.permute.xlu0 %2039 }
 0x312   : > { %v2046_v48 = vmul.f32 %v4904_v1, %v2040_v54 }
 0x313   : > { %v1895_v36 = vpop.permute.xlu1 %1894  ;;  %v1905_v18 = vadd.f32 %v1903_v24, %v1877_v43 }
 0x314   : > { %v1902_v3 = vmul.f32 %v4924_v52, %v1895_v36 }
 0x315   : > { %v1907_v16 = vmax.f32 %v1905_v18, 0.0 }
 0x316   : > { %v1904_v17 = vadd.f32 %v1902_v3, %v1876_v37  ;;  %v2064_v9 = vpop.permute.xlu0 %2063 }
 0x317   : > { %v2067_v57 = vmul.f32 %v4917_v4, %v2064_v9 }
 0x318   : > { %v1906_v59 = vmax.f32 %v1904_v17, 0.0  ;;  %v2018_v51 = vpop.permute.xlu1 %2017 }
 0x319   : > { %v2024_v20 = vmul.f32 %v4892_v44, %v2018_v51 }
 0x31a   : > { %v1908_v53 = vpack.c.bf16 %v1907_v16, %v1906_v59 }
 0x31b   : > { %v2026_v60 = vadd.f32 %v2024_v20, %v4439_v8  ;;  %v2210_v3 = vpop.permute.xlu0 %2209 }
 0x31c   : > { %3164 = vmatmul.mubr.bf16.vlgmr.msra.gmra.mxu0 %v1908_v53  ;;  %v2022_v0 = vpop.permute.xlu1 %2021  ;;  %v2216_v59 = vmul.f32 %v4892_v44, %v2210_v3 }
 0x31d   : > { %3188 = vmatpush3.bf16.msra.mxu0 %v4638_v58  ;;  %3203 = vmatprep.mubr.msk.bf16.mxu0 %vm3819_vm4, %v3817_v29  ;;  %v2025_v40 = vmul.f32 %v4892_v44, %v2022_v0  ;;  %v2048_v55 = vadd.f32 %v2046_v48, %v2026_v60 }
 0x31e   : > { %3189 = vmatprep.subr.bf16.mxu0 %v3817_v29 }
 0x31f   : > { %v2027_v28 = vadd.f32 %v2025_v40, %v4441_v13 }
 0x321   : > { %3190 = vmatpush3.bf16.msra.mxu0 %v4649_v30  ;;  %v2044_v11 = vpop.permute.xlu1 %2043 }
 0x322   : > { %3191 = vmatprep.subr.bf16.mxu0 %v3817_v29  ;;  %v2047_v10 = vmul.f32 %v4904_v1, %v2044_v11  ;;  %v2236_v16 = vpop.permute.xlu0 %2235  ;;  %v2218_v11 = vadd.f32 %v2216_v59, %v4439_v8 }
 0x323   : > { %v2239_v51 = vmul.f32 %v4904_v1, %v2236_v16 }
 0x324   : > { %v2049_v5 = vadd.f32 %v2047_v10, %v2027_v28 }
 0x325   : > { %3192 = vmatpush3.bf16.msra.mxu0 %v4659_v32 }
 0x326   : > { %3193 = vmatprep.subr.bf16.mxu0 %v3817_v29  ;;  %v2060_v63 = vpop.permute.xlu1 %2059  ;;  %v2069_v31 = vadd.f32 %v2067_v57, %v2049_v5 }
 0x327   : > { %v2066_v56 = vmul.f32 %v4917_v4, %v2060_v63 }
 0x329   : > { %3194 = vmatpush3.bf16.msra.mxu0 %v4776_v34  ;;  %v2068_v50 = vadd.f32 %v2066_v56, %v2048_v55 }
 0x32a   : > { %3195 = vmatprep.subr.bf16.mxu0 %v3817_v29 }
 0x32d   : > { %3196 = vmatpush3.bf16.msra.mxu0 %v4787_v35 }
 0x32e   : > { %3197 = vmatprep.subr.bf16.mxu0 %v3817_v29 }
 0x331   : > { %3198 = vmatpush3.bf16.msra.mxu0 %v4800_v21 }
 0x332   : > { %v2087_v38 = vpop.permute.xlu1 %2086  ;;  %3199 = vmatprep.subr.bf16.mxu0 %v3817_v29 }
 0x333   : > { %v2094_v27 = vmul.f32 %v4924_v52, %v2087_v38 }
 0x335   : > { %3200 = vmatpush3.bf16.msra.mxu0 %v4814_v46  ;;  %v2096_v6 = vadd.f32 %v2094_v27, %v2068_v50 }
 0x336   : > { %3201 = vmatprep.subr.bf16.mxu0 %v3817_v29 }
 0x337   : > { %v2098_v39 = vmax.f32 %v2096_v6, 0.0  ;;  %v3507_v6 = vld [vmem:[#allocation10 + $0x38] sm:$0xff]  }
 0x338   : > { %v2092_v47 = vpop.permute.xlu1 %2091 }
 0x339   : > { %v2095_v61 = vmul.f32 %v4924_v52, %v2092_v47  ;;  %3202 = vmatpush3.bf16.msra.mxu0 %v4822_v42 }
 0x33a   : > { %3227 = vmatprep.subr.bf16.mxu0 %v3817_v29 }
 0x33b   : > { %v2097_v7 = vadd.f32 %v2095_v61, %v2069_v31 }
 0x33d   : > { %v2099_v25 = vmax.f32 %v2097_v7, 0.0  ;;  %v2214_v23 = vpop.permute.xlu1 %2213  ;;  %v3508_v7 = vld [vmem:[#allocation10 + $0x30] sm:$0xff]  }
 0x33f   : > { %v2100_v14 = vpack.c.bf16 %v2099_v25, %v2098_v39 }
 0x341   : > { %3204 = vmatmul.mubr.bf16.vlgmr.msra.gmra.mxu0 %v2100_v14  ;;  %v3509_v14 = vld [vmem:[#allocation10 + $0x28] sm:$0xff]  }
 0x342   : > { %3228 = vmatpush3.bf16.msra.mxu0 %v4638_v58  ;;  %3243 = vmatprep.mubr.msk.bf16.mxu0 %vm3819_vm4, %v3817_v29  ;;  %v2232_v18 = vpop.permute.xlu1 %2231 }
 0x343   : > { %3229 = vmatprep.subr.bf16.mxu0 %v3817_v29 }
 0x346   : > { %3230 = vmatpush3.bf16.msra.mxu0 %v4649_v30 }
 0x347   : > { %3231 = vmatprep.subr.bf16.mxu0 %v3817_v29  ;;  %v2252_v17 = vpop.permute.xlu1 %2251 }
 0x34a   : > { %3232 = vmatpush3.bf16.msra.mxu0 %v4659_v32 }
 0x34b   : > { %3233 = vmatprep.subr.bf16.mxu0 %v3817_v29  ;;  %v2256_v53 = vpop.permute.xlu1 %2255 }
 0x34c   : > { %v2259_v0 = vmul.f32 %v4917_v4, %v2256_v53 }
 0x34e   : > { %3234 = vmatpush3.bf16.msra.mxu0 %v4776_v34 }
 0x34f   : > { %3235 = vmatprep.subr.bf16.mxu0 %v3817_v29 }
 0x351   : > { %v4973_v58 = vpop.f32.mrf.mxu1 }
 0x352   : > { %3236 = vmatpush3.bf16.msra.mxu0 %v4787_v35 }
 0x353   : > { %3237 = vmatprep.subr.bf16.mxu0 %v3817_v29  ;;  %v3185_v30 = vpop.f32.mrf.mxu1 }
 0x355   : > { %v4976_v32 = vpop.f32.mrf.mxu1 }
 0x356   : > { %3238 = vmatpush3.bf16.msra.mxu0 %v4800_v21 }
 0x357   : > { %3239 = vmatprep.subr.bf16.mxu0 %v3817_v29  ;;  %v3186_v34 = vpop.f32.mrf.mxu1 }
 0x35a   : > { %3240 = vmatpush3.bf16.msra.mxu0 %v4814_v46 }
 0x35b   : > { %3241 = vmatprep.subr.bf16.mxu0 %v3817_v29 }
 0x35e   : > { %3242 = vmatpush3.bf16.msra.mxu0 %v4822_v42 }
 0x35f   : > { %3267 = vmatprep.subr.bf16.mxu0 %v3817_v29 }
 0x365   : > { %v1562_v35 = vpop.f32.mrf.mxu0 }
 0x366   : > { %v1610_v49 = vadd.f32 %v4878_v19, %v1562_v35  ;;  %v2217_v19 = vmul.f32 %v4892_v44, %v2214_v23 }
 0x367   : > { %v3085_v21 = vpop.f32.mrf.mxu0 }
 0x368   : > { %v1616_v22 = vadd.f32 %v4865_v2, %v1610_v49 }
 0x369   : > { %v1565_v41 = vpop.f32.mrf.mxu0 }
 0x36a   : > { %v1618_v46 = vmax.f32 %v1616_v22, 0.0  ;;  %v1613_v26 = vadd.f32 %v4881_v12, %v1565_v41  ;;  %v2219_v12 = vadd.f32 %v2217_v19, %v4441_v13  ;;  %v3511_v22 = vld [vmem:[#allocation10 + $0x18] sm:$0xff]   ;;  %v3512_v41 = vld [vmem:[#allocation10 + $0x10] sm:$0xff]  }
 0x36b   : > { %v3086_v42 = vpop.f32.mrf.mxu0 }
 0x36c   : > { %v1620_v43 = vmax.f32 %v4896_v45, %v1618_v46  ;;  %v1617_v24 = vadd.f32 %v4865_v2, %v1613_v26  ;;  %v2238_v45 = vmul.f32 %v4904_v1, %v2232_v18  ;;  %v2241_v20 = vadd.f32 %v2239_v51, %v2219_v12  ;;  %v3513_v46 = vld [vmem:[#allocation10 + $0x8] sm:$0xff]   ;;  %v3514_v26 = vld [vmem:[#allocation10] sm:$0xff]  }
 0x36e   : > { %v1619_v36 = vmax.f32 %v1617_v24, 0.0  ;;  %v2240_v54 = vadd.f32 %v2238_v45, %v2218_v11  ;;  %v2261_v48 = vadd.f32 %v2259_v0, %v2241_v20 }
 0x370   : > { %v1621_v37 = vmax.f32 %v4910_v33, %v1619_v36  ;;  %v2258_v33 = vmul.f32 %v4917_v4, %v2252_v17 }
 0x372   : > { %v2260_v13 = vadd.f32 %v2258_v33, %v2240_v54 }
 0x374   : > { %v4992_v40 = vpop.f32.mrf.mxu1 }
 0x376   : > { %v3225_v38 = vpop.f32.mrf.mxu1 }
 0x378   : > { %v4996_v56 = vpop.f32.mrf.mxu1 }
 0x37a   : > { %v3226_v5 = vpop.f32.mrf.mxu1 }
 0x383   : > { %v2284_v63 = vpop.permute.xlu1 %2283 }
 0x384   : > { %v2279_v44 = vpop.permute.xlu0 %2278  ;;  %v2287_v60 = vmul.f32 %v4924_v52, %v2284_v63 }
 0x385   : > { %v2286_v10 = vmul.f32 %v4924_v52, %v2279_v44 }
 0x386   : > { %v2289_v1 = vadd.f32 %v2287_v60, %v2261_v48 }
 0x387   : > { %v2288_v28 = vadd.f32 %v2286_v10, %v2260_v13 }
 0x388   : > { %v2291_v8 = vmax.f32 %v2289_v1, 0.0  ;;  %v1754_v9 = vpop.f32.mrf.mxu0 }
 0x389   : > { %v2290_v4 = vmax.f32 %v2288_v28, 0.0  ;;  %v1802_v57 = vadd.f32 %v4899_v62, %v1754_v9  ;;  %v2391_v9 = vld [vmem:[%s4078_s22 + $0x8] sm:$0xff] }
 0x38a   : > { %v3125_v55 = vpop.f32.mrf.mxu0 }
 0x38b   : > { %v2292_v27 = vpack.c.bf16 %v2291_v8, %v2290_v4  ;;  %v1808_v50 = vadd.f32 %v4865_v2, %v1802_v57  ;;  %v2390_v8 = vld [vmem:[%s4078_s22] sm:$0xff] }
 0x38c   : > { %v1757_v47 = vpop.f32.mrf.mxu0 }
 0x38d   : > { %v1810_v31 = vmax.f32 %v1808_v50, 0.0  ;;  %v1805_v52 = vadd.f32 %v4912_v15, %v1757_v47  ;;  %3244 = vmatmul.mubr.bf16.vlgmr.msra.gmra.mxu0 %v2292_v27  ;;  %v3510_v15 = vld [vmem:[#allocation10 + $0x20] sm:$0xff]  }
 0x38e   : > { %v3126_v61 = vpop.f32.mrf.mxu0  ;;  %3268 = vmatpush3.bf16.msra.mxu0 %v3507_v6  ;;  %3283 = vmatprep.mubr.msk.bf16.mxu0 %vm3819_vm4, %v3817_v29  ;;  %v2775_v27 = vld [vmem:[%s5142_s10] ss:$0 sm:$0xff] }
 0x38f   : > { %v1812_v39 = vmax.f32 %v1620_v43, %v1810_v31  ;;  %v1809_v62 = vadd.f32 %v4865_v2, %v1805_v52  ;;  %3269 = vmatprep.subr.bf16.mxu0 %v3817_v29 }
 0x391   : > { %v1811_v25 = vmax.f32 %v1809_v62, 0.0 }
 0x392   : > { %3270 = vmatpush3.bf16.msra.mxu0 %v3508_v7 }
 0x393   : > { %v1813_v30 = vmax.f32 %v1621_v37, %v1811_v25  ;;  %3271 = vmatprep.subr.bf16.mxu0 %v3817_v29 }
 0x395   : > { %v2377_v34 = vpop.f32.mrf.mxu1 }
 0x396   : > { %3272 = vmatpush3.bf16.msra.mxu0 %v3509_v14 }
 0x397   : > { %3273 = vmatprep.subr.bf16.mxu0 %v3817_v29  ;;  %v3265_v35 = vpop.f32.mrf.mxu1 }
 0x399   : > { %v2380_v49 = vpop.f32.mrf.mxu1 }
 0x39a   : > { %3274 = vmatpush3.bf16.msra.mxu0 %v3510_v15 }
 0x39b   : > { %3275 = vmatprep.subr.bf16.mxu0 %v3817_v29  ;;  %v3266_v21 = vpop.f32.mrf.mxu1 }
 0x39e   : > { %3276 = vmatpush3.bf16.msra.mxu0 %v3511_v22 }
 0x39f   : > { %3277 = vmatprep.subr.bf16.mxu0 %v3817_v29 }
 0x3a2   : > { %3278 = vmatpush3.bf16.msra.mxu0 %v3512_v41 }
 0x3a3   : > { %3279 = vmatprep.subr.bf16.mxu0 %v3817_v29 }
 0x3a6   : > { %3280 = vmatpush3.bf16.msra.mxu0 %v3513_v46 }
 0x3a7   : > { %3281 = vmatprep.subr.bf16.mxu0 %v3817_v29 }
 0x3aa   : > { %3282 = vmatpush3.bf16.msra.mxu0 %v3514_v26 }
 0x3dc   : > { %v1946_v23 = vpop.f32.mrf.mxu0 }
 0x3dd   : > { %v1994_v42 = vadd.f32 %v4973_v58, %v1946_v23 }
 0x3de   : > { %v3165_v43 = vpop.f32.mrf.mxu0 }
 0x3df   : > { %v2000_v24 = vadd.f32 %v4865_v2, %v1994_v42 }
 0x3e0   : > { %v1949_v36 = vpop.f32.mrf.mxu0 }
 0x3e1   : > { %v2002_v37 = vmax.f32 %v2000_v24, 0.0  ;;  %v1997_v18 = vadd.f32 %v4976_v32, %v1949_v36 }
 0x3e2   : > { %v3166_v3 = vpop.f32.mrf.mxu0 }
 0x3e3   : > { %v2004_v17 = vmax.f32 %v1812_v39, %v2002_v37  ;;  %v2001_v19 = vadd.f32 %v4865_v2, %v1997_v18 }
 0x3e5   : > { %v2003_v16 = vmax.f32 %v2001_v19, 0.0 }
 0x3e7   : > { %v2005_v59 = vmax.f32 %v1813_v30, %v2003_v16 }
 0x401   : > { %v2138_v53 = vpop.f32.mrf.mxu0 }
 0x402   : > { %v2186_v29 = vadd.f32 %v4992_v40, %v2138_v53 }
 0x403   : > { %v3205_v12 = vpop.f32.mrf.mxu0 }
 0x404   : > { %v2192_v51 = vadd.f32 %v4865_v2, %v2186_v29 }
 0x405   : > { %v2141_v58 = vpop.f32.mrf.mxu0 }
 0x406   : > { %v2194_v45 = vmax.f32 %v2192_v51, 0.0  ;;  %v2189_v0 = vadd.f32 %v4996_v56, %v2141_v58 }
 0x407   : > { %v3206_v11 = vpop.f32.mrf.mxu0 }
 0x408   : > { %v2196_v33 = vmax.f32 %v2004_v17, %v2194_v45  ;;  %v2193_v32 = vadd.f32 %v4865_v2, %v2189_v0 }
 0x40a   : > { %v2195_v20 = vmax.f32 %v2193_v32, 0.0 }
 0x40c   : > { %v2197_v54 = vmax.f32 %v2005_v59, %v2195_v20 }
 0x44d   : > { %v2330_v63 = vpop.f32.mrf.mxu0 }
 0x44e   : > { %v2378_v48 = vadd.f32 %v2377_v34, %v2330_v63 }
 0x44f   : > { %v3245_v44 = vpop.f32.mrf.mxu0 }
 0x450   : > { %v2384_v40 = vadd.f32 %v4865_v2, %v2378_v48 }
 0x451   : > { %v2333_v60 = vpop.f32.mrf.mxu0 }
 0x452   : > { %v2386_v13 = vmax.f32 %v2384_v40, 0.0  ;;  %v2381_v10 = vadd.f32 %v2380_v49, %v2333_v60 }
 0x453   : > { %v3246_v38 = vpop.f32.mrf.mxu0 }
 0x454   : > { %v2385_v1 = vadd.f32 %v4865_v2, %v2381_v10  ;;  %v2388_v28 = vmax.f32 %v2196_v33, %v2386_v13 }
 0x456   : > { %v2387_v56 = vmax.f32 %v2385_v1, 0.0  ;;  %v2392_v57 = vadd.f32 %v2390_v8, %v2388_v28 }
 0x458   : > { %v2389_v4 = vmax.f32 %v2197_v54, %v2387_v56 }
 0x45a   : > { %v2393_v5 = vadd.f32 %v2391_v9, %v2389_v4 }
 0x45c   : > { %v2394_v55 = vpack.c.bf16 %v2393_v5, %v2392_v57 }
 0x45e   : > { %3284 = vmatmul.mubr.bf16.vlgmr.msra.gmra.mxu0 %v2394_v55 }
 0x51e   : > { %v2500_v50 = vpop.f32.mrf.mxu0 }
 0x51f   : > { %v2501_v47 = vadd.f32 %v2775_v27, %v2500_v50 }
 0x520   : > { %v3285_v2 = vpop.f32.mrf.mxu0 }
 0x521   : > { %v2507_v6 = vmax.f32 %v2501_v47, 0.0 }
 0x522   : > { %v2503_v31 = vpop.f32.mrf.mxu0 }
 0x523   : > { %2509 = vst [vmem:[%s615_s11] sm:$0xff] %v2507_v6  ;;  %v2504_v52 = vadd.f32 %v2775_v27, %v2503_v31 }
 0x524   : > { %v3286_v61 = vpop.f32.mrf.mxu0 }
 0x525   : > { %v2508_v7 = vmax.f32 %v2504_v52, 0.0 }
 0x527   : > { %2510 = vst [vmem:[%s615_s11 + $0x8] sm:$0xff] %v2508_v7 }
 0x528   : > { %3718 = shalt.err (!%p3715_p0)
}
 0x529   : > { %s3719_s16 = scalar_lea.hbm %s5034_s20, 256  ;;  %s3723_s14 = scalar_lea.hbm %s5144_s8, 512 }
 0x52a   : > { %p3720_p8 = scmp.ne.s32.totalorder %s5034_s20, %s3719_s16  ;;  %p3724_p3 = scmp.lt.s32.totalorder %s5034_s20, %s5144_s8 }
 0x52b   : > { %p3725_p11 = scmp.lt.s32.totalorder %s3723_s14, %s3719_s16 }
 0x52c   : > { %p3721_p2 = pnand %p3720_p8, %p4021_p13 }
 0x52d   : > { %p3726_p4 = por %p3725_p11, %p3724_p3 }
 0x52e   : > { %p3722_p5 = pneg %p3721_p2 }
 0x530   : > { %p3727_p10 = pnand %p3726_p4, %p3722_p5 }
 0x532   : > { %3730 = shalt.err (!%p3727_p10)
}
 0x533   : > { %s3844_s27 = smov 128   ;;  %s3845_s10 = smov 8  }
 0x534   : > { %3303 = dma.vmem_to_hbm [thread:$0]  (%p4021_p13), %s5029_s21, 256, %s5034_s20, %s2512_s4, %s3844_s27, %s3844_s27, %s3845_s10  }
 0x535 PF: > { %s5145_s11 = sld [smem:[#allocation17_spill]] }
 0x536   : > { %s5147_s22 = sld [smem:[#allocation19_spill]] }
 0x53b   : > { %s2542_s25 = sand.u32 1, %s5145_s11  }
 0x53c   : > { %p5148_p7 = scmp.ge.s32.totalorder %s5147_s22, 2  ;;  %s2543_s17 = scalar_lea.sflag [#allocation4], %s2542_s25 }
 0x53e   : > { %p3323_p1 = pnand %p5148_p7, %p3961_p6 }
 0x540   : > { %p3324_p12 = pneg %p3323_p1 }
 0x542   : > { %3772 = dma.done.wait (%p3324_p12), %s2543_s17, 256  }
 0x543   : > { %3774 = vsyncadd (%p3324_p12), %s2543_s17, 4294967040  ;;  %s33_s30 = sadd.s32 1, %s5147_s22   ;;  %s5149_s28 = sld [smem:[#allocation18_spill]] }
 0x544   : > { %p30_p9 = scmp.ge.s32.totalorder %s33_s30, 4   ;;  %s5150_s27 = sld [smem:[#allocation23_spill]] }
 0x545   : > { %s5151_s18 = sld [smem:[#allocation22_spill]]  ;;  %s5152_s25 = smov %s3781_s26 }
 0x547   :  { %32 = sbr.rel (!%p30_p9) target bundleno = 18 (0x12), region = 155 }
 0x549   : > { %s5153_s26 = smov %s5149_s28  ;;  %s5154_s28 = smov %s3793_s29 }
 0x54b   : > { %s5155_s29 = smov %s5151_s18 }
 0x54c   :  { %2548 = vsyncpa [#allocation3], 1 }
 0x54d   :  { %2550 = vsyncpa [#allocation3 + $0x1], 1 }
 0x54e   :  { %2551 = vsyncpa [#allocation6], 1 }
 0x54f   :  { %2553 = vsyncpa [#allocation6 + $0x1], 1 }
 0x550   :  { %2554 = vsyncpa [#allocation9], 1 }
 0x551   :  { %2555 = vsyncpa [#allocation4], 1 }
 0x552   :  { %2557 = vsyncpa [#allocation4 + $0x1], 1 }

</bundles_post_ra>
